<compile_context>
chip_gen: v7x
topology: tpu7x:2x2x1
jax: 0.10.0
libtpu: 0.0.40
codegen_flags: <defaults>
</compile_context>

<pallas_src>
import math

import jax
import jax.numpy as jnp
from jax.experimental import pallas as pl
from jax.experimental.pallas import tpu as pltpu

# ---------------- model hyper-parameters (small, deterministic) -------------
DIM = 32        # model dim
DEPTH = 2       # number of (attention, ff) layers
HEADS = 2
DIM_HEAD = 16
INNER = HEADS * DIM_HEAD          # 32
MLP_DIM = 64
SCALE = DIM_HEAD ** (-0.5)
EPS = 1e-5                        # nn.LayerNorm default eps

B = 2           # batch
N = 8           # sequence length

_INV_SQRT2 = 1.0 / math.sqrt(2.0)


# ----------------------------- kernel ---------------------------------------
def _layernorm(x, gamma, beta):
    # one-pass statistics: the two reductions are independent (parallel XLU work)
    mu = jnp.mean(x, axis=-1, keepdims=True)
    ms = jnp.mean(x * x, axis=-1, keepdims=True)
    var = ms - mu * mu
    return (x - mu) * jax.lax.rsqrt(var + EPS) * gamma + beta


def transformer_kernel(x_ref,
                       attn_g_ref, attn_b_ref, wqkv_ref, wout_ref,
                       ff_g_ref, ff_b_ref, w1_ref, b1_ref, w2_ref, b2_ref,
                       o_ref):
    """Whole DEPTH-layer forward, fully fused; single invocation, no grid."""
    # (B, N, DIM) -> (B*N, DIM): leading-dim merge only, layout unchanged (free).
    x = x_ref[...].reshape(B * N, DIM)

    for l in range(DEPTH):                           # static unroll over layers
        # ---------- pre-norm multi-head self-attention + residual ----------
        xn = _layernorm(x, attn_g_ref[l], attn_b_ref[l])

        # One wide fused QKV projection per layer: (B*N, DIM) @ (DIM, 3*INNER).
        # The attention scale is already folded into the q columns of wqkv.
        qkv = jnp.dot(xn, wqkv_ref[l], preferred_element_type=jnp.float32)   # (BN, 3*INNER)
        q = qkv[:, 0 * INNER:1 * INNER].reshape(B, N, INNER)
        k = qkv[:, 1 * INNER:2 * INNER].reshape(B, N, INNER)
        v = qkv[:, 2 * INNER:3 * INNER].reshape(B, N, INNER)

        ctx_heads = []
        for h in range(HEADS):                       # static unroll; tiny head count
            sl = slice(h * DIM_HEAD, (h + 1) * DIM_HEAD)
            qh, kh, vh = q[..., sl], k[..., sl], v[..., sl]          # (B, N, Dh)
            # batched q @ k^T over the batch dim (no Python loop over B)
            s = jnp.einsum('bqd,bkd->bqk', qh, kh,
                           preferred_element_type=jnp.float32)        # (B, N, N)
            s = s - jnp.max(s, axis=-1, keepdims=True)
            e = jnp.exp(s)
            p = e * pl.reciprocal(jnp.sum(e, axis=-1, keepdims=True), approx=False)
            ctx_heads.append(jnp.einsum('bqk,bkd->bqd', p, vh,
                                        preferred_element_type=jnp.float32))  # (B, N, Dh)

        # lane-concat heads, then ONE output projection per layer
        ctx = jnp.concatenate(ctx_heads, axis=-1).reshape(B * N, INNER)
        x = x + jnp.dot(ctx, wout_ref[l], preferred_element_type=jnp.float32)

        # ---------- pre-norm MLP (Linear -> GELU -> Linear) + residual ------
        xn = _layernorm(x, ff_g_ref[l], ff_b_ref[l])
        h1 = jnp.dot(xn, w1_ref[l], preferred_element_type=jnp.float32) + b1_ref[l]
        h1 = 0.5 * h1 * (1.0 + jax.lax.erf(h1 * _INV_SQRT2))    # exact-erf GELU
        x = x + jnp.dot(h1, w2_ref[l], preferred_element_type=jnp.float32) + b2_ref[l]

    o_ref[...] = x.reshape(B, N, DIM)                # leading-dim split, free


# --------------------------- parameters & wrapper ----------------------------
def init_params(key):
    """Deterministic synthetic parameters (shapes per the module __init__)."""
    layers = []
    for _ in range(DEPTH):
        key, k1, k2, k3, k4 = jax.random.split(key, 5)
        layers.append({
            # Attention
            "attn_gamma": jnp.ones((DIM,), jnp.float32),
            "attn_beta": jnp.zeros((DIM,), jnp.float32),
            "wqkv": jax.random.normal(k1, (DIM, 3 * INNER), jnp.float32) * 0.05,
            "wout": jax.random.normal(k2, (INNER, DIM), jnp.float32) * 0.05,
            # FeedForward
            "ff_gamma": jnp.ones((DIM,), jnp.float32),
            "ff_beta": jnp.zeros((DIM,), jnp.float32),
            "w1": jax.random.normal(k3, (DIM, MLP_DIM), jnp.float32) * 0.05,
            "b1": jnp.zeros((MLP_DIM,), jnp.float32),
            "w2": jax.random.normal(k4, (MLP_DIM, DIM), jnp.float32) * 0.05,
            "b2": jnp.zeros((DIM,), jnp.float32),
        })
    return layers


def prepare_params(params):
    """ONE-TIME preprocessing (outside the jitted hot path): stack per-layer
    weights along a leading layer axis and fold the attention scale into the
    q columns of wqkv."""
    wqkv = []
    for p in params:
        w = p["wqkv"]
        w = w.at[:, :INNER].multiply(SCALE)           # fold dim_head**-0.5 into q
        wqkv.append(w)
    return {
        "attn_gamma": jnp.stack([p["attn_gamma"] for p in params]),  # (DEPTH, DIM)
        "attn_beta": jnp.stack([p["attn_beta"] for p in params]),    # (DEPTH, DIM)
        "wqkv": jnp.stack(wqkv),                                     # (DEPTH, DIM, 3*INNER)
        "wout": jnp.stack([p["wout"] for p in params]),              # (DEPTH, INNER, DIM)
        "ff_gamma": jnp.stack([p["ff_gamma"] for p in params]),      # (DEPTH, DIM)
        "ff_beta": jnp.stack([p["ff_beta"] for p in params]),        # (DEPTH, DIM)
        "w1": jnp.stack([p["w1"] for p in params]),                  # (DEPTH, DIM, MLP_DIM)
        "b1": jnp.stack([p["b1"] for p in params]),                  # (DEPTH, MLP_DIM)
        "w2": jnp.stack([p["w2"] for p in params]),                  # (DEPTH, MLP_DIM, DIM)
        "b2": jnp.stack([p["b2"] for p in params]),                  # (DEPTH, DIM)
    }


def _cost_estimate():
    bn = B * N
    flops_per_layer = (
        2 * bn * DIM * 3 * INNER                    # fused qkv projection
        + 2 * HEADS * B * N * N * DIM_HEAD          # scores
        + 2 * HEADS * B * N * N * DIM_HEAD          # contexts
        + 2 * bn * INNER * DIM                      # output projection
        + 2 * bn * DIM * MLP_DIM                    # ff layer 1
        + 2 * bn * MLP_DIM * DIM                    # ff layer 2
    )
    transc_per_layer = HEADS * B * N * N + bn * MLP_DIM   # exp (softmax) + erf (gelu)
    weight_bytes_per_layer = 4 * (DIM * 3 * INNER + INNER * DIM
                                  + DIM * MLP_DIM + MLP_DIM * DIM
                                  + MLP_DIM + 5 * DIM)
    bytes_accessed = 4 * 2 * bn * DIM + DEPTH * weight_bytes_per_layer
    return pl.CostEstimate(flops=DEPTH * flops_per_layer,
                           transcendentals=DEPTH * transc_per_layer,
                           bytes_accessed=bytes_accessed)


_VMEM_SPEC = pl.BlockSpec(memory_space=pltpu.MemorySpace.VMEM)
_COST = _cost_estimate()


@jax.jit
def transformer_forward(x, stacked):
    """x: (B, N, DIM); stacked: pre-stacked weight dict (prepare_params output)."""
    operands = (x,
                stacked["attn_gamma"], stacked["attn_beta"],
                stacked["wqkv"], stacked["wout"],
                stacked["ff_gamma"], stacked["ff_beta"],
                stacked["w1"], stacked["b1"], stacked["w2"], stacked["b2"])
    return pl.pallas_call(
        transformer_kernel,
        out_shape=jax.ShapeDtypeStruct((B, N, DIM), jnp.float32),
        in_specs=[_VMEM_SPEC] * len(operands),       # whole arrays resident in VMEM
        out_specs=_VMEM_SPEC,
        input_output_aliases={0: 0},                 # overwrite the activation buffer
        cost_estimate=_COST,
    )(*operands)


# --------------------------------- main ---------------------------------------
if __name__ == "__main__":
    key = jax.random.PRNGKey(0)
    kx, kp = jax.random.split(key)
    x = jax.random.normal(kx, (B, N, DIM), jnp.float32)

    params = init_params(kp)
    stacked = prepare_params(params)                 # one-time, outside the hot path

    out = transformer_forward(x, stacked)
    jax.block_until_ready(out)
    assert out.shape == (B, N, DIM)
    print("KERNEL_OK")
</pallas_src>

<mosaic_0001>
module attributes {stable_mosaic.version = 11 : i64} {
  func.func @transformer_kernel(%arg0: memref<2x8x32xf32, #tpu.memory_space<vmem>>, %arg1: memref<2x32xf32, #tpu.memory_space<vmem>>, %arg2: memref<2x32xf32, #tpu.memory_space<vmem>>, %arg3: memref<2x32x96xf32, #tpu.memory_space<vmem>>, %arg4: memref<2x32x32xf32, #tpu.memory_space<vmem>>, %arg5: memref<2x32xf32, #tpu.memory_space<vmem>>, %arg6: memref<2x32xf32, #tpu.memory_space<vmem>>, %arg7: memref<2x32x64xf32, #tpu.memory_space<vmem>>, %arg8: memref<2x64xf32, #tpu.memory_space<vmem>>, %arg9: memref<2x64x32xf32, #tpu.memory_space<vmem>>, %arg10: memref<2x32xf32, #tpu.memory_space<vmem>>, %arg11: memref<2x8x32xf32, #tpu.memory_space<vmem>>) attributes {dimension_semantics = [], scalar_prefetch = 0 : i64, scratch_operands = 0 : i64, tpu.core_type = #tpu.core_type<tc>} {
    %c0 = arith.constant 0 : index
    %c0_0 = arith.constant 0 : index
    %c0_1 = arith.constant 0 : index
    %0 = vector.load %arg0[%c0, %c0_0, %c0_1] : memref<2x8x32xf32, #tpu.memory_space<vmem>>, vector<2x8x32xf32>
    %1 = vector.shape_cast %0 : vector<2x8x32xf32> to vector<16x32xf32>
    %c0_2 = arith.constant 0 : index
    %c0_3 = arith.constant 0 : index
    %2 = vector.load %arg1[%c0_2, %c0_3] : memref<2x32xf32, #tpu.memory_space<vmem>>, vector<1x32xf32>
    %3 = vector.shape_cast %2 : vector<1x32xf32> to vector<32xf32>
    %c0_4 = arith.constant 0 : index
    %c0_5 = arith.constant 0 : index
    %4 = vector.load %arg2[%c0_4, %c0_5] : memref<2x32xf32, #tpu.memory_space<vmem>>, vector<1x32xf32>
    %5 = vector.shape_cast %4 : vector<1x32xf32> to vector<32xf32>
    %cst = arith.constant dense<0.000000e+00> : vector<16xf32>
    %6 = vector.multi_reduction <add>, %1, %cst [1] : vector<16x32xf32> to vector<16xf32>
    %7 = vector.shape_cast %6 : vector<16xf32> to vector<16x1xf32>
    %cst_6 = arith.constant 3.200000e+01 : f32
    %8 = vector.broadcast %cst_6 : f32 to vector<16x1xf32>
    %9 = arith.divf %7, %8 : vector<16x1xf32>
    %10 = arith.mulf %1, %1 : vector<16x32xf32>
    %cst_7 = arith.constant dense<0.000000e+00> : vector<16xf32>
    %11 = vector.multi_reduction <add>, %10, %cst_7 [1] : vector<16x32xf32> to vector<16xf32>
    %12 = vector.shape_cast %11 : vector<16xf32> to vector<16x1xf32>
    %cst_8 = arith.constant 3.200000e+01 : f32
    %13 = vector.broadcast %cst_8 : f32 to vector<16x1xf32>
    %14 = arith.divf %12, %13 : vector<16x1xf32>
    %15 = arith.mulf %9, %9 : vector<16x1xf32>
    %16 = arith.subf %14, %15 : vector<16x1xf32>
    %17 = vector.broadcast %9 : vector<16x1xf32> to vector<16x32xf32>
    %18 = arith.subf %1, %17 : vector<16x32xf32>
    %cst_9 = arith.constant 9.99999974E-6 : f32
    %19 = vector.broadcast %cst_9 : f32 to vector<16x1xf32>
    %20 = arith.addf %16, %19 : vector<16x1xf32>
    %21 = math.rsqrt %20 : vector<16x1xf32>
    %22 = vector.broadcast %21 : vector<16x1xf32> to vector<16x32xf32>
    %23 = arith.mulf %18, %22 : vector<16x32xf32>
    %24 = vector.shape_cast %3 : vector<32xf32> to vector<1x32xf32>
    %25 = vector.broadcast %24 : vector<1x32xf32> to vector<16x32xf32>
    %26 = arith.mulf %23, %25 : vector<16x32xf32>
    %27 = vector.shape_cast %5 : vector<32xf32> to vector<1x32xf32>
    %28 = vector.broadcast %27 : vector<1x32xf32> to vector<16x32xf32>
    %29 = arith.addf %26, %28 : vector<16x32xf32>
    %c0_10 = arith.constant 0 : index
    %c0_11 = arith.constant 0 : index
    %c0_12 = arith.constant 0 : index
    %30 = vector.load %arg3[%c0_10, %c0_11, %c0_12] : memref<2x32x96xf32, #tpu.memory_space<vmem>>, vector<1x32x96xf32>
    %31 = vector.shape_cast %30 : vector<1x32x96xf32> to vector<32x96xf32>
    %cst_13 = arith.constant dense<0.000000e+00> : vector<16x96xf32>
    %32 = tpu.matmul %29, %31, %cst_13 {dimension_numbers = #tpu.dot_dimension_numbers<[1], [0], [0], [1], [0, 0, 1, 1], [], []>} : vector<16x32xf32>, vector<32x96xf32>, vector<16x96xf32> -> vector<16x96xf32>
    %33 = vector.extract_strided_slice %32 {offsets = [0, 0], sizes = [16, 32], strides = [1, 1]} : vector<16x96xf32> to vector<16x32xf32>
    %34 = vector.shape_cast %33 : vector<16x32xf32> to vector<2x8x32xf32>
    %35 = vector.extract_strided_slice %32 {offsets = [0, 32], sizes = [16, 32], strides = [1, 1]} : vector<16x96xf32> to vector<16x32xf32>
    %36 = vector.shape_cast %35 : vector<16x32xf32> to vector<2x8x32xf32>
    %37 = vector.extract_strided_slice %32 {offsets = [0, 64], sizes = [16, 32], strides = [1, 1]} : vector<16x96xf32> to vector<16x32xf32>
    %38 = vector.shape_cast %37 : vector<16x32xf32> to vector<2x8x32xf32>
    %39 = vector.extract_strided_slice %34 {offsets = [0, 0, 0], sizes = [2, 8, 16], strides = [1, 1, 1]} : vector<2x8x32xf32> to vector<2x8x16xf32>
    %40 = vector.extract_strided_slice %36 {offsets = [0, 0, 0], sizes = [2, 8, 16], strides = [1, 1, 1]} : vector<2x8x32xf32> to vector<2x8x16xf32>
    %41 = vector.extract_strided_slice %38 {offsets = [0, 0, 0], sizes = [2, 8, 16], strides = [1, 1, 1]} : vector<2x8x32xf32> to vector<2x8x16xf32>
    "tpu.trace_start"() <{level = 10 : i32, message = "bqd,bkd->bqk"}> : () -> ()
    %cst_14 = arith.constant dense<0.000000e+00> : vector<2x8x8xf32>
    %42 = tpu.matmul %39, %40, %cst_14 {dimension_numbers = #tpu.dot_dimension_numbers<[2], [2], [1], [1], [0, 0, 0, 1, 1, 1], [0], [0]>} : vector<2x8x16xf32>, vector<2x8x16xf32>, vector<2x8x8xf32> -> vector<2x8x8xf32>
    "tpu.trace_stop"() : () -> ()
    %cst_15 = arith.constant dense<0xFF800000> : vector<2x8xf32>
    %43 = vector.multi_reduction <maximumf>, %42, %cst_15 [2] : vector<2x8x8xf32> to vector<2x8xf32>
    %44 = vector.shape_cast %43 : vector<2x8xf32> to vector<2x8x1xf32>
    %45 = vector.broadcast %44 : vector<2x8x1xf32> to vector<2x8x8xf32>
    %46 = arith.subf %42, %45 : vector<2x8x8xf32>
    %47 = math.exp %46 : vector<2x8x8xf32>
    %cst_16 = arith.constant dense<0.000000e+00> : vector<2x8xf32>
    %48 = vector.multi_reduction <add>, %47, %cst_16 [2] : vector<2x8x8xf32> to vector<2x8xf32>
    %49 = vector.shape_cast %48 : vector<2x8xf32> to vector<2x8x1xf32>
    %50 = tpu.reciprocal %49 : vector<2x8x1xf32> -> vector<2x8x1xf32>
    %51 = vector.broadcast %50 : vector<2x8x1xf32> to vector<2x8x8xf32>
    %52 = arith.mulf %47, %51 : vector<2x8x8xf32>
    "tpu.trace_start"() <{level = 10 : i32, message = "bqk,bkd->bqd"}> : () -> ()
    %cst_17 = arith.constant dense<0.000000e+00> : vector<2x8x16xf32>
    %53 = tpu.matmul %52, %41, %cst_17 {dimension_numbers = #tpu.dot_dimension_numbers<[2], [1], [1], [2], [0, 0, 0, 1, 1, 2], [0], [0]>} : vector<2x8x8xf32>, vector<2x8x16xf32>, vector<2x8x16xf32> -> vector<2x8x16xf32>
    "tpu.trace_stop"() : () -> ()
    %54 = vector.extract_strided_slice %34 {offsets = [0, 0, 16], sizes = [2, 8, 16], strides = [1, 1, 1]} : vector<2x8x32xf32> to vector<2x8x16xf32>
    %55 = vector.extract_strided_slice %36 {offsets = [0, 0, 16], sizes = [2, 8, 16], strides = [1, 1, 1]} : vector<2x8x32xf32> to vector<2x8x16xf32>
    %56 = vector.extract_strided_slice %38 {offsets = [0, 0, 16], sizes = [2, 8, 16], strides = [1, 1, 1]} : vector<2x8x32xf32> to vector<2x8x16xf32>
    "tpu.trace_start"() <{level = 10 : i32, message = "bqd,bkd->bqk"}> : () -> ()
    %cst_18 = arith.constant dense<0.000000e+00> : vector<2x8x8xf32>
    %57 = tpu.matmul %54, %55, %cst_18 {dimension_numbers = #tpu.dot_dimension_numbers<[2], [2], [1], [1], [0, 0, 0, 1, 1, 1], [0], [0]>} : vector<2x8x16xf32>, vector<2x8x16xf32>, vector<2x8x8xf32> -> vector<2x8x8xf32>
    "tpu.trace_stop"() : () -> ()
    %cst_19 = arith.constant dense<0xFF800000> : vector<2x8xf32>
    %58 = vector.multi_reduction <maximumf>, %57, %cst_19 [2] : vector<2x8x8xf32> to vector<2x8xf32>
    %59 = vector.shape_cast %58 : vector<2x8xf32> to vector<2x8x1xf32>
    %60 = vector.broadcast %59 : vector<2x8x1xf32> to vector<2x8x8xf32>
    %61 = arith.subf %57, %60 : vector<2x8x8xf32>
    %62 = math.exp %61 : vector<2x8x8xf32>
    %cst_20 = arith.constant dense<0.000000e+00> : vector<2x8xf32>
    %63 = vector.multi_reduction <add>, %62, %cst_20 [2] : vector<2x8x8xf32> to vector<2x8xf32>
    %64 = vector.shape_cast %63 : vector<2x8xf32> to vector<2x8x1xf32>
    %65 = tpu.reciprocal %64 : vector<2x8x1xf32> -> vector<2x8x1xf32>
    %66 = vector.broadcast %65 : vector<2x8x1xf32> to vector<2x8x8xf32>
    %67 = arith.mulf %62, %66 : vector<2x8x8xf32>
    "tpu.trace_start"() <{level = 10 : i32, message = "bqk,bkd->bqd"}> : () -> ()
    %cst_21 = arith.constant dense<0.000000e+00> : vector<2x8x16xf32>
    %68 = tpu.matmul %67, %56, %cst_21 {dimension_numbers = #tpu.dot_dimension_numbers<[2], [1], [1], [2], [0, 0, 0, 1, 1, 2], [0], [0]>} : vector<2x8x8xf32>, vector<2x8x16xf32>, vector<2x8x16xf32> -> vector<2x8x16xf32>
    "tpu.trace_stop"() : () -> ()
    %69 = tpu.concatenate %53, %68 in 2 : vector<2x8x16xf32>, vector<2x8x16xf32> -> vector<2x8x32xf32>
    %70 = vector.shape_cast %69 : vector<2x8x32xf32> to vector<16x32xf32>
    %c0_22 = arith.constant 0 : index
    %c0_23 = arith.constant 0 : index
    %c0_24 = arith.constant 0 : index
    %71 = vector.load %arg4[%c0_22, %c0_23, %c0_24] : memref<2x32x32xf32, #tpu.memory_space<vmem>>, vector<1x32x32xf32>
    %72 = vector.shape_cast %71 : vector<1x32x32xf32> to vector<32x32xf32>
    %cst_25 = arith.constant dense<0.000000e+00> : vector<16x32xf32>
    %73 = tpu.matmul %70, %72, %cst_25 {dimension_numbers = #tpu.dot_dimension_numbers<[1], [0], [0], [1], [0, 0, 1, 1], [], []>} : vector<16x32xf32>, vector<32x32xf32>, vector<16x32xf32> -> vector<16x32xf32>
    %74 = arith.addf %1, %73 : vector<16x32xf32>
    %c0_26 = arith.constant 0 : index
    %c0_27 = arith.constant 0 : index
    %75 = vector.load %arg5[%c0_26, %c0_27] : memref<2x32xf32, #tpu.memory_space<vmem>>, vector<1x32xf32>
    %76 = vector.shape_cast %75 : vector<1x32xf32> to vector<32xf32>
    %c0_28 = arith.constant 0 : index
    %c0_29 = arith.constant 0 : index
    %77 = vector.load %arg6[%c0_28, %c0_29] : memref<2x32xf32, #tpu.memory_space<vmem>>, vector<1x32xf32>
    %78 = vector.shape_cast %77 : vector<1x32xf32> to vector<32xf32>
    %cst_30 = arith.constant dense<0.000000e+00> : vector<16xf32>
    %79 = vector.multi_reduction <add>, %74, %cst_30 [1] : vector<16x32xf32> to vector<16xf32>
    %80 = vector.shape_cast %79 : vector<16xf32> to vector<16x1xf32>
    %cst_31 = arith.constant 3.200000e+01 : f32
    %81 = vector.broadcast %cst_31 : f32 to vector<16x1xf32>
    %82 = arith.divf %80, %81 : vector<16x1xf32>
    %83 = arith.mulf %74, %74 : vector<16x32xf32>
    %cst_32 = arith.constant dense<0.000000e+00> : vector<16xf32>
    %84 = vector.multi_reduction <add>, %83, %cst_32 [1] : vector<16x32xf32> to vector<16xf32>
    %85 = vector.shape_cast %84 : vector<16xf32> to vector<16x1xf32>
    %cst_33 = arith.constant 3.200000e+01 : f32
    %86 = vector.broadcast %cst_33 : f32 to vector<16x1xf32>
    %87 = arith.divf %85, %86 : vector<16x1xf32>
    %88 = arith.mulf %82, %82 : vector<16x1xf32>
    %89 = arith.subf %87, %88 : vector<16x1xf32>
    %90 = vector.broadcast %82 : vector<16x1xf32> to vector<16x32xf32>
    %91 = arith.subf %74, %90 : vector<16x32xf32>
    %cst_34 = arith.constant 9.99999974E-6 : f32
    %92 = vector.broadcast %cst_34 : f32 to vector<16x1xf32>
    %93 = arith.addf %89, %92 : vector<16x1xf32>
    %94 = math.rsqrt %93 : vector<16x1xf32>
    %95 = vector.broadcast %94 : vector<16x1xf32> to vector<16x32xf32>
    %96 = arith.mulf %91, %95 : vector<16x32xf32>
    %97 = vector.shape_cast %76 : vector<32xf32> to vector<1x32xf32>
    %98 = vector.broadcast %97 : vector<1x32xf32> to vector<16x32xf32>
    %99 = arith.mulf %96, %98 : vector<16x32xf32>
    %100 = vector.shape_cast %78 : vector<32xf32> to vector<1x32xf32>
    %101 = vector.broadcast %100 : vector<1x32xf32> to vector<16x32xf32>
    %102 = arith.addf %99, %101 : vector<16x32xf32>
    %c0_35 = arith.constant 0 : index
    %c0_36 = arith.constant 0 : index
    %c0_37 = arith.constant 0 : index
    %103 = vector.load %arg7[%c0_35, %c0_36, %c0_37] : memref<2x32x64xf32, #tpu.memory_space<vmem>>, vector<1x32x64xf32>
    %104 = vector.shape_cast %103 : vector<1x32x64xf32> to vector<32x64xf32>
    %cst_38 = arith.constant dense<0.000000e+00> : vector<16x64xf32>
    %105 = tpu.matmul %102, %104, %cst_38 {dimension_numbers = #tpu.dot_dimension_numbers<[1], [0], [0], [1], [0, 0, 1, 1], [], []>} : vector<16x32xf32>, vector<32x64xf32>, vector<16x64xf32> -> vector<16x64xf32>
    %c0_39 = arith.constant 0 : index
    %c0_40 = arith.constant 0 : index
    %106 = vector.load %arg8[%c0_39, %c0_40] : memref<2x64xf32, #tpu.memory_space<vmem>>, vector<1x64xf32>
    %107 = vector.shape_cast %106 : vector<1x64xf32> to vector<64xf32>
    %108 = vector.shape_cast %107 : vector<64xf32> to vector<1x64xf32>
    %109 = vector.broadcast %108 : vector<1x64xf32> to vector<16x64xf32>
    %110 = arith.addf %105, %109 : vector<16x64xf32>
    %cst_41 = arith.constant 5.000000e-01 : f32
    %111 = vector.broadcast %cst_41 : f32 to vector<16x64xf32>
    %112 = arith.mulf %111, %110 : vector<16x64xf32>
    %cst_42 = arith.constant 0.707106769 : f32
    %113 = vector.broadcast %cst_42 : f32 to vector<16x64xf32>
    %114 = arith.mulf %110, %113 : vector<16x64xf32>
    %115 = math.erf %114 : vector<16x64xf32>
    %cst_43 = arith.constant 1.000000e+00 : f32
    %116 = vector.broadcast %cst_43 : f32 to vector<16x64xf32>
    %117 = arith.addf %116, %115 : vector<16x64xf32>
    %118 = arith.mulf %112, %117 : vector<16x64xf32>
    %c0_44 = arith.constant 0 : index
    %c0_45 = arith.constant 0 : index
    %c0_46 = arith.constant 0 : index
    %119 = vector.load %arg9[%c0_44, %c0_45, %c0_46] : memref<2x64x32xf32, #tpu.memory_space<vmem>>, vector<1x64x32xf32>
    %120 = vector.shape_cast %119 : vector<1x64x32xf32> to vector<64x32xf32>
    %cst_47 = arith.constant dense<0.000000e+00> : vector<16x32xf32>
    %121 = tpu.matmul %118, %120, %cst_47 {dimension_numbers = #tpu.dot_dimension_numbers<[1], [0], [0], [1], [0, 0, 1, 1], [], []>} : vector<16x64xf32>, vector<64x32xf32>, vector<16x32xf32> -> vector<16x32xf32>
    %122 = arith.addf %74, %121 : vector<16x32xf32>
    %c0_48 = arith.constant 0 : index
    %c0_49 = arith.constant 0 : index
    %123 = vector.load %arg10[%c0_48, %c0_49] : memref<2x32xf32, #tpu.memory_space<vmem>>, vector<1x32xf32>
    %124 = vector.shape_cast %123 : vector<1x32xf32> to vector<32xf32>
    %125 = vector.shape_cast %124 : vector<32xf32> to vector<1x32xf32>
    %126 = vector.broadcast %125 : vector<1x32xf32> to vector<16x32xf32>
    %127 = arith.addf %122, %126 : vector<16x32xf32>
    %c1 = arith.constant 1 : index
    %c0_50 = arith.constant 0 : index
    %128 = vector.load %arg1[%c1, %c0_50] : memref<2x32xf32, #tpu.memory_space<vmem>>, vector<1x32xf32>
    %129 = vector.shape_cast %128 : vector<1x32xf32> to vector<32xf32>
    %c1_51 = arith.constant 1 : index
    %c0_52 = arith.constant 0 : index
    %130 = vector.load %arg2[%c1_51, %c0_52] : memref<2x32xf32, #tpu.memory_space<vmem>>, vector<1x32xf32>
    %131 = vector.shape_cast %130 : vector<1x32xf32> to vector<32xf32>
    %cst_53 = arith.constant dense<0.000000e+00> : vector<16xf32>
    %132 = vector.multi_reduction <add>, %127, %cst_53 [1] : vector<16x32xf32> to vector<16xf32>
    %133 = vector.shape_cast %132 : vector<16xf32> to vector<16x1xf32>
    %cst_54 = arith.constant 3.200000e+01 : f32
    %134 = vector.broadcast %cst_54 : f32 to vector<16x1xf32>
    %135 = arith.divf %133, %134 : vector<16x1xf32>
    %136 = arith.mulf %127, %127 : vector<16x32xf32>
    %cst_55 = arith.constant dense<0.000000e+00> : vector<16xf32>
    %137 = vector.multi_reduction <add>, %136, %cst_55 [1] : vector<16x32xf32> to vector<16xf32>
    %138 = vector.shape_cast %137 : vector<16xf32> to vector<16x1xf32>
    %cst_56 = arith.constant 3.200000e+01 : f32
    %139 = vector.broadcast %cst_56 : f32 to vector<16x1xf32>
    %140 = arith.divf %138, %139 : vector<16x1xf32>
    %141 = arith.mulf %135, %135 : vector<16x1xf32>
    %142 = arith.subf %140, %141 : vector<16x1xf32>
    %143 = vector.broadcast %135 : vector<16x1xf32> to vector<16x32xf32>
    %144 = arith.subf %127, %143 : vector<16x32xf32>
    %cst_57 = arith.constant 9.99999974E-6 : f32
    %145 = vector.broadcast %cst_57 : f32 to vector<16x1xf32>
    %146 = arith.addf %142, %145 : vector<16x1xf32>
    %147 = math.rsqrt %146 : vector<16x1xf32>
    %148 = vector.broadcast %147 : vector<16x1xf32> to vector<16x32xf32>
    %149 = arith.mulf %144, %148 : vector<16x32xf32>
    %150 = vector.shape_cast %129 : vector<32xf32> to vector<1x32xf32>
    %151 = vector.broadcast %150 : vector<1x32xf32> to vector<16x32xf32>
    %152 = arith.mulf %149, %151 : vector<16x32xf32>
    %153 = vector.shape_cast %131 : vector<32xf32> to vector<1x32xf32>
    %154 = vector.broadcast %153 : vector<1x32xf32> to vector<16x32xf32>
    %155 = arith.addf %152, %154 : vector<16x32xf32>
    %c1_58 = arith.constant 1 : index
    %c0_59 = arith.constant 0 : index
    %c0_60 = arith.constant 0 : index
    %156 = vector.load %arg3[%c1_58, %c0_59, %c0_60] : memref<2x32x96xf32, #tpu.memory_space<vmem>>, vector<1x32x96xf32>
    %157 = vector.shape_cast %156 : vector<1x32x96xf32> to vector<32x96xf32>
    %cst_61 = arith.constant dense<0.000000e+00> : vector<16x96xf32>
    %158 = tpu.matmul %155, %157, %cst_61 {dimension_numbers = #tpu.dot_dimension_numbers<[1], [0], [0], [1], [0, 0, 1, 1], [], []>} : vector<16x32xf32>, vector<32x96xf32>, vector<16x96xf32> -> vector<16x96xf32>
    %159 = vector.extract_strided_slice %158 {offsets = [0, 0], sizes = [16, 32], strides = [1, 1]} : vector<16x96xf32> to vector<16x32xf32>
    %160 = vector.shape_cast %159 : vector<16x32xf32> to vector<2x8x32xf32>
    %161 = vector.extract_strided_slice %158 {offsets = [0, 32], sizes = [16, 32], strides = [1, 1]} : vector<16x96xf32> to vector<16x32xf32>
    %162 = vector.shape_cast %161 : vector<16x32xf32> to vector<2x8x32xf32>
    %163 = vector.extract_strided_slice %158 {offsets = [0, 64], sizes = [16, 32], strides = [1, 1]} : vector<16x96xf32> to vector<16x32xf32>
    %164 = vector.shape_cast %163 : vector<16x32xf32> to vector<2x8x32xf32>
    %165 = vector.extract_strided_slice %160 {offsets = [0, 0, 0], sizes = [2, 8, 16], strides = [1, 1, 1]} : vector<2x8x32xf32> to vector<2x8x16xf32>
    %166 = vector.extract_strided_slice %162 {offsets = [0, 0, 0], sizes = [2, 8, 16], strides = [1, 1, 1]} : vector<2x8x32xf32> to vector<2x8x16xf32>
    %167 = vector.extract_strided_slice %164 {offsets = [0, 0, 0], sizes = [2, 8, 16], strides = [1, 1, 1]} : vector<2x8x32xf32> to vector<2x8x16xf32>
    "tpu.trace_start"() <{level = 10 : i32, message = "bqd,bkd->bqk"}> : () -> ()
    %cst_62 = arith.constant dense<0.000000e+00> : vector<2x8x8xf32>
    %168 = tpu.matmul %165, %166, %cst_62 {dimension_numbers = #tpu.dot_dimension_numbers<[2], [2], [1], [1], [0, 0, 0, 1, 1, 1], [0], [0]>} : vector<2x8x16xf32>, vector<2x8x16xf32>, vector<2x8x8xf32> -> vector<2x8x8xf32>
    "tpu.trace_stop"() : () -> ()
    %cst_63 = arith.constant dense<0xFF800000> : vector<2x8xf32>
    %169 = vector.multi_reduction <maximumf>, %168, %cst_63 [2] : vector<2x8x8xf32> to vector<2x8xf32>
    %170 = vector.shape_cast %169 : vector<2x8xf32> to vector<2x8x1xf32>
    %171 = vector.broadcast %170 : vector<2x8x1xf32> to vector<2x8x8xf32>
    %172 = arith.subf %168, %171 : vector<2x8x8xf32>
    %173 = math.exp %172 : vector<2x8x8xf32>
    %cst_64 = arith.constant dense<0.000000e+00> : vector<2x8xf32>
    %174 = vector.multi_reduction <add>, %173, %cst_64 [2] : vector<2x8x8xf32> to vector<2x8xf32>
    %175 = vector.shape_cast %174 : vector<2x8xf32> to vector<2x8x1xf32>
    %176 = tpu.reciprocal %175 : vector<2x8x1xf32> -> vector<2x8x1xf32>
    %177 = vector.broadcast %176 : vector<2x8x1xf32> to vector<2x8x8xf32>
    %178 = arith.mulf %173, %177 : vector<2x8x8xf32>
    "tpu.trace_start"() <{level = 10 : i32, message = "bqk,bkd->bqd"}> : () -> ()
    %cst_65 = arith.constant dense<0.000000e+00> : vector<2x8x16xf32>
    %179 = tpu.matmul %178, %167, %cst_65 {dimension_numbers = #tpu.dot_dimension_numbers<[2], [1], [1], [2], [0, 0, 0, 1, 1, 2], [0], [0]>} : vector<2x8x8xf32>, vector<2x8x16xf32>, vector<2x8x16xf32> -> vector<2x8x16xf32>
    "tpu.trace_stop"() : () -> ()
    %180 = vector.extract_strided_slice %160 {offsets = [0, 0, 16], sizes = [2, 8, 16], strides = [1, 1, 1]} : vector<2x8x32xf32> to vector<2x8x16xf32>
    %181 = vector.extract_strided_slice %162 {offsets = [0, 0, 16], sizes = [2, 8, 16], strides = [1, 1, 1]} : vector<2x8x32xf32> to vector<2x8x16xf32>
    %182 = vector.extract_strided_slice %164 {offsets = [0, 0, 16], sizes = [2, 8, 16], strides = [1, 1, 1]} : vector<2x8x32xf32> to vector<2x8x16xf32>
    "tpu.trace_start"() <{level = 10 : i32, message = "bqd,bkd->bqk"}> : () -> ()
    %cst_66 = arith.constant dense<0.000000e+00> : vector<2x8x8xf32>
    %183 = tpu.matmul %180, %181, %cst_66 {dimension_numbers = #tpu.dot_dimension_numbers<[2], [2], [1], [1], [0, 0, 0, 1, 1, 1], [0], [0]>} : vector<2x8x16xf32>, vector<2x8x16xf32>, vector<2x8x8xf32> -> vector<2x8x8xf32>
    "tpu.trace_stop"() : () -> ()
    %cst_67 = arith.constant dense<0xFF800000> : vector<2x8xf32>
    %184 = vector.multi_reduction <maximumf>, %183, %cst_67 [2] : vector<2x8x8xf32> to vector<2x8xf32>
    %185 = vector.shape_cast %184 : vector<2x8xf32> to vector<2x8x1xf32>
    %186 = vector.broadcast %185 : vector<2x8x1xf32> to vector<2x8x8xf32>
    %187 = arith.subf %183, %186 : vector<2x8x8xf32>
    %188 = math.exp %187 : vector<2x8x8xf32>
    %cst_68 = arith.constant dense<0.000000e+00> : vector<2x8xf32>
    %189 = vector.multi_reduction <add>, %188, %cst_68 [2] : vector<2x8x8xf32> to vector<2x8xf32>
    %190 = vector.shape_cast %189 : vector<2x8xf32> to vector<2x8x1xf32>
    %191 = tpu.reciprocal %190 : vector<2x8x1xf32> -> vector<2x8x1xf32>
    %192 = vector.broadcast %191 : vector<2x8x1xf32> to vector<2x8x8xf32>
    %193 = arith.mulf %188, %192 : vector<2x8x8xf32>
    "tpu.trace_start"() <{level = 10 : i32, message = "bqk,bkd->bqd"}> : () -> ()
    %cst_69 = arith.constant dense<0.000000e+00> : vector<2x8x16xf32>
    %194 = tpu.matmul %193, %182, %cst_69 {dimension_numbers = #tpu.dot_dimension_numbers<[2], [1], [1], [2], [0, 0, 0, 1, 1, 2], [0], [0]>} : vector<2x8x8xf32>, vector<2x8x16xf32>, vector<2x8x16xf32> -> vector<2x8x16xf32>
    "tpu.trace_stop"() : () -> ()
    %195 = tpu.concatenate %179, %194 in 2 : vector<2x8x16xf32>, vector<2x8x16xf32> -> vector<2x8x32xf32>
    %196 = vector.shape_cast %195 : vector<2x8x32xf32> to vector<16x32xf32>
    %c1_70 = arith.constant 1 : index
    %c0_71 = arith.constant 0 : index
    %c0_72 = arith.constant 0 : index
    %197 = vector.load %arg4[%c1_70, %c0_71, %c0_72] : memref<2x32x32xf32, #tpu.memory_space<vmem>>, vector<1x32x32xf32>
    %198 = vector.shape_cast %197 : vector<1x32x32xf32> to vector<32x32xf32>
    %cst_73 = arith.constant dense<0.000000e+00> : vector<16x32xf32>
    %199 = tpu.matmul %196, %198, %cst_73 {dimension_numbers = #tpu.dot_dimension_numbers<[1], [0], [0], [1], [0, 0, 1, 1], [], []>} : vector<16x32xf32>, vector<32x32xf32>, vector<16x32xf32> -> vector<16x32xf32>
    %200 = arith.addf %127, %199 : vector<16x32xf32>
    %c1_74 = arith.constant 1 : index
    %c0_75 = arith.constant 0 : index
    %201 = vector.load %arg5[%c1_74, %c0_75] : memref<2x32xf32, #tpu.memory_space<vmem>>, vector<1x32xf32>
    %202 = vector.shape_cast %201 : vector<1x32xf32> to vector<32xf32>
    %c1_76 = arith.constant 1 : index
    %c0_77 = arith.constant 0 : index
    %203 = vector.load %arg6[%c1_76, %c0_77] : memref<2x32xf32, #tpu.memory_space<vmem>>, vector<1x32xf32>
    %204 = vector.shape_cast %203 : vector<1x32xf32> to vector<32xf32>
    %cst_78 = arith.constant dense<0.000000e+00> : vector<16xf32>
    %205 = vector.multi_reduction <add>, %200, %cst_78 [1] : vector<16x32xf32> to vector<16xf32>
    %206 = vector.shape_cast %205 : vector<16xf32> to vector<16x1xf32>
    %cst_79 = arith.constant 3.200000e+01 : f32
    %207 = vector.broadcast %cst_79 : f32 to vector<16x1xf32>
    %208 = arith.divf %206, %207 : vector<16x1xf32>
    %209 = arith.mulf %200, %200 : vector<16x32xf32>
    %cst_80 = arith.constant dense<0.000000e+00> : vector<16xf32>
    %210 = vector.multi_reduction <add>, %209, %cst_80 [1] : vector<16x32xf32> to vector<16xf32>
    %211 = vector.shape_cast %210 : vector<16xf32> to vector<16x1xf32>
    %cst_81 = arith.constant 3.200000e+01 : f32
    %212 = vector.broadcast %cst_81 : f32 to vector<16x1xf32>
    %213 = arith.divf %211, %212 : vector<16x1xf32>
    %214 = arith.mulf %208, %208 : vector<16x1xf32>
    %215 = arith.subf %213, %214 : vector<16x1xf32>
    %216 = vector.broadcast %208 : vector<16x1xf32> to vector<16x32xf32>
    %217 = arith.subf %200, %216 : vector<16x32xf32>
    %cst_82 = arith.constant 9.99999974E-6 : f32
    %218 = vector.broadcast %cst_82 : f32 to vector<16x1xf32>
    %219 = arith.addf %215, %218 : vector<16x1xf32>
    %220 = math.rsqrt %219 : vector<16x1xf32>
    %221 = vector.broadcast %220 : vector<16x1xf32> to vector<16x32xf32>
    %222 = arith.mulf %217, %221 : vector<16x32xf32>
    %223 = vector.shape_cast %202 : vector<32xf32> to vector<1x32xf32>
    %224 = vector.broadcast %223 : vector<1x32xf32> to vector<16x32xf32>
    %225 = arith.mulf %222, %224 : vector<16x32xf32>
    %226 = vector.shape_cast %204 : vector<32xf32> to vector<1x32xf32>
    %227 = vector.broadcast %226 : vector<1x32xf32> to vector<16x32xf32>
    %228 = arith.addf %225, %227 : vector<16x32xf32>
    %c1_83 = arith.constant 1 : index
    %c0_84 = arith.constant 0 : index
    %c0_85 = arith.constant 0 : index
    %229 = vector.load %arg7[%c1_83, %c0_84, %c0_85] : memref<2x32x64xf32, #tpu.memory_space<vmem>>, vector<1x32x64xf32>
    %230 = vector.shape_cast %229 : vector<1x32x64xf32> to vector<32x64xf32>
    %cst_86 = arith.constant dense<0.000000e+00> : vector<16x64xf32>
    %231 = tpu.matmul %228, %230, %cst_86 {dimension_numbers = #tpu.dot_dimension_numbers<[1], [0], [0], [1], [0, 0, 1, 1], [], []>} : vector<16x32xf32>, vector<32x64xf32>, vector<16x64xf32> -> vector<16x64xf32>
    %c1_87 = arith.constant 1 : index
    %c0_88 = arith.constant 0 : index
    %232 = vector.load %arg8[%c1_87, %c0_88] : memref<2x64xf32, #tpu.memory_space<vmem>>, vector<1x64xf32>
    %233 = vector.shape_cast %232 : vector<1x64xf32> to vector<64xf32>
    %234 = vector.shape_cast %233 : vector<64xf32> to vector<1x64xf32>
    %235 = vector.broadcast %234 : vector<1x64xf32> to vector<16x64xf32>
    %236 = arith.addf %231, %235 : vector<16x64xf32>
    %cst_89 = arith.constant 5.000000e-01 : f32
    %237 = vector.broadcast %cst_89 : f32 to vector<16x64xf32>
    %238 = arith.mulf %237, %236 : vector<16x64xf32>
    %cst_90 = arith.constant 0.707106769 : f32
    %239 = vector.broadcast %cst_90 : f32 to vector<16x64xf32>
    %240 = arith.mulf %236, %239 : vector<16x64xf32>
    %241 = math.erf %240 : vector<16x64xf32>
    %cst_91 = arith.constant 1.000000e+00 : f32
    %242 = vector.broadcast %cst_91 : f32 to vector<16x64xf32>
    %243 = arith.addf %242, %241 : vector<16x64xf32>
    %244 = arith.mulf %238, %243 : vector<16x64xf32>
    %c1_92 = arith.constant 1 : index
    %c0_93 = arith.constant 0 : index
    %c0_94 = arith.constant 0 : index
    %245 = vector.load %arg9[%c1_92, %c0_93, %c0_94] : memref<2x64x32xf32, #tpu.memory_space<vmem>>, vector<1x64x32xf32>
    %246 = vector.shape_cast %245 : vector<1x64x32xf32> to vector<64x32xf32>
    %cst_95 = arith.constant dense<0.000000e+00> : vector<16x32xf32>
    %247 = tpu.matmul %244, %246, %cst_95 {dimension_numbers = #tpu.dot_dimension_numbers<[1], [0], [0], [1], [0, 0, 1, 1], [], []>} : vector<16x64xf32>, vector<64x32xf32>, vector<16x32xf32> -> vector<16x32xf32>
    %248 = arith.addf %200, %247 : vector<16x32xf32>
    %c1_96 = arith.constant 1 : index
    %c0_97 = arith.constant 0 : index
    %249 = vector.load %arg10[%c1_96, %c0_97] : memref<2x32xf32, #tpu.memory_space<vmem>>, vector<1x32xf32>
    %250 = vector.shape_cast %249 : vector<1x32xf32> to vector<32xf32>
    %251 = vector.shape_cast %250 : vector<32xf32> to vector<1x32xf32>
    %252 = vector.broadcast %251 : vector<1x32xf32> to vector<16x32xf32>
    %253 = arith.addf %248, %252 : vector<16x32xf32>
    %254 = vector.shape_cast %253 : vector<16x32xf32> to vector<2x8x32xf32>
    %c0_98 = arith.constant 0 : index
    %c0_99 = arith.constant 0 : index
    %c0_100 = arith.constant 0 : index
    %255 = vector.load %arg11[%c0_98, %c0_99, %c0_100] : memref<2x8x32xf32, #tpu.memory_space<vmem>>, vector<2x8x32xf32>
    tpu.vector_store %arg11[%c0_98, %c0_99, %c0_100], %254 {strides = array<i32>} : memref<2x8x32xf32, #tpu.memory_space<vmem>>, vector<2x8x32xf32>,
    return
  }
}

</mosaic_0001>

<bundles_post_ra>
// kernel: transformer_forward.1
= control target key start
LH: loop header
LB: loop body
LE: loop exit
PB: predicated region body
PF: predicated region fallthrough
CT: control target
= control target key end

     0   :  { %16 = vsyncpa [#allocation3], 0  ;;  %s3374_s0 = inlined_call_operand.hbm [shape: f32[2,8,32], index: 0, kind: input, shape index: {}, may-alias: {0,11}]   ;;  %s3375_s1 = inlined_call_operand.vmem [shape: f32[2,32], index: 1, kind: input, shape index: {}]   ;;  %s3376_s2 = inlined_call_operand.vmem [shape: f32[2,32], index: 2, kind: input, shape index: {}]   ;;  %s3377_s3 = inlined_call_operand.vmem [shape: f32[2,32,96], index: 3, kind: input, shape index: {}]   ;;  %s3378_s4 = inlined_call_operand.vmem [shape: f32[2,32,32], index: 4, kind: input, shape index: {}]   ;;  %s3379_s5 = inlined_call_operand.vmem [shape: f32[2,32], index: 5, kind: input, shape index: {}]   ;;  %s3380_s6 = inlined_call_operand.vmem [shape: f32[2,32], index: 6, kind: input, shape index: {}]   ;;  %s3381_s7 = inlined_call_operand.vmem [shape: f32[2,32,64], index: 7, kind: input, shape index: {}]   ;;  %s3382_s8 = inlined_call_operand.vmem [shape: f32[2,64], index: 8, kind: input, shape index: {}]   ;;  %s3383_s9 = inlined_call_operand.vmem [shape: f32[2,64,32], index: 9, kind: input, shape index: {}]   ;;  %s3384_s10 = inlined_call_operand.vmem [shape: f32[2,32], index: 10, kind: input, shape index: {}]   ;;  %s3385_s11 = inlined_call_operand.hbm [shape: f32[2,8,32], index: 11, kind: output, shape index: {}, may-alias: {0,11}]  }
   0x1   :  { %17 = vsyncpa [#allocation4], 0  ;;  %s2875_s17 = smov [#allocation2]   ;;  %s2827_s21 = scalar_lea.hbm %s3374_s0, 256 }
   0x2   :  { %s23_s18 = sshll.u32 %s2875_s17, 4  ;;  %p2828_p0 = scmp.ne.s32.totalorder %s3374_s0, %s2827_s21  ;;  %s24_s18 = int_to_ptr.vmem [resolvable:$true] %s23_s18 }
   0x3   :  { %p2831_p1 = scmp.lt.u32.totalorder %s2827_s21, %s3374_s0 }
   0x5   :  { %p2833_p2 = pnand %p2831_p1, %p2828_p0 }
   0x7   :  { %2836 = shalt.err (!%p2833_p2)
}
   0x8   :  { %s2837_s26 = scalar_lea.vmem %s24_s18, 256  ;;  %p2842_p4 = scmp.lt.s32.totalorder %s24_s18, %s24_s18 }
   0x9   :  { %p2838_p3 = scmp.ne.s32.totalorder %s24_s18, %s2837_s26  ;;  %p2843_p5 = scmp.lt.s32.totalorder %s2837_s26, %s2837_s26 }
   0xb   :  { %p2844_p6 = por %p2843_p5, %p2842_p4 }
   0xd   :  { %p2845_p7 = pnand %p2844_p6, %p2838_p3 }
   0xf   :  { %2848 = shalt.err (!%p2845_p7)
}
  0x10   :  { %s2876_s27 = smov 128   ;;  %s2877_s28 = smov 8  }
  0x11   :  { %29 = dma.hbm_to_vmem [thread:$0]  %s3374_s0, 256, %s24_s18, [#allocation3], %s2876_s27, %s2876_s27, %s2877_s28  }
  0x12   :  { %2871 = dma.done.wait [#allocation3], 256  }
  0x13   :  { %2872 = vsyncadd [#allocation3], 4294967040  ;;  %vm57_vm0 = vcmask 261120   ;;  %v2962_v0 = vld [vmem:[#allocation2] sm:$0xff]  ;;  %v2964_v1 = vld [vmem:[#allocation2 + $0x8] sm:$0xff]  ;;  %v2878_v40 = vmov 0.0  }
  0x14   :  { %v58_v2 = vsel %vm57_vm0, %v2962_v0, 0.0  ;;  %v67_v3 = vmul.f32 %v2962_v0, %v2962_v0  ;;  %v68_v4 = vmul.f32 %v2964_v1, %v2964_v1  ;;  %v61_v6 = vsel %vm57_vm0, %v2964_v1, 0.0  ;;  %v101_v8 = vld [vmem:[%s3377_s3] sm:$0xff]  ;;  %v102_v9 = vld [vmem:[%s3377_s3 + $0x8] sm:$0xff]  ;;  %v103_v10 = vld [vmem:[%s3377_s3 + $0x10] sm:$0xff]  ;;  %2516 = vmatprep.subr.mxu0 %v2878_v40  ;;  %s2880_s23 = smov 96  }
  0x15   :  { %59 = vadd.xlane.f32.xlu0 %v58_v2  ;;  %v2679_v11 = vpack.c.bf16 %v102_v9, %v101_v8  ;;  %v104_v12 = vld [vmem:[%s3377_s3 + $0x18] sm:$0xff]  ;;  %v2335_v30 = vld [vmem:[%s3375_s1] ss:$0 sm:$0xff]  ;;  %vm2879_vm1 = vmmov 0   ;;  %vm189_vm2 = vcmask 130048   ;;  %vm341_vm3 = vcmask 64512  }
  0x16   :  { %v69_v5 = vsel %vm57_vm0, %v67_v3, 0.0  ;;  %v72_v7 = vsel %vm57_vm0, %v68_v4, 0.0  ;;  %v2683_v13 = vpack.c.bf16 %v104_v12, %v103_v10  ;;  %v2336_v32 = vld [vmem:[%s3376_s2] ss:$0 sm:$0xff]  ;;  %2518 = vmatprep.mubr.msk.f32.mxu0 %vm2879_vm1, %v2878_v40  ;;  %s2881_s24 = smov 64   ;;  %s2882_s25 = smov 80  }
  0x17   :  { %70 = vadd.xlane.f32.xlu1 %v69_v5  ;;  %2680 = vmatprep.subr.bf16.mxu1 %v2679_v11  ;;  %s2883_s26 = smov 112   ;;  %s2884_s29 = smov 48   ;;  %vm1095_vm4 = vcmask 523264  }
  0x18   :  { %2682 = vmatpush3.bf16.msra.mxu1 %v2679_v11  ;;  %s2885_s18 = smov 16   ;;  %s2886_s17 = smov [#allocation5]  }
  0x19   :  { %62 = vadd.xlane.f32.xlu0 %v61_v6  ;;  %2684 = vmatprep.subr.bf16.mxu1 %v2683_v13  ;;  %s2323_s19 = sshll.u32 %s2886_s17, 4  ;;  %s2324_s19 = int_to_ptr.vmem [resolvable:$true] %s2323_s19 }
  0x1a   :  { %s2849_s20 = scalar_lea.vmem %s2324_s19, 256  ;;  %p2854_p9 = scmp.lt.s32.totalorder %s2324_s19, %s2324_s19 }
  0x1b   :  { %73 = vadd.xlane.f32.xlu1 %v72_v7  ;;  %p2850_p8 = scmp.ne.s32.totalorder %s2324_s19, %s2849_s20  ;;  %p2855_p10 = scmp.lt.s32.totalorder %s2849_s20, %s2849_s20 }
  0x1c   :  { %2686 = vmatpush3.bf16.msra.mxu1 %v2683_v13 }
  0x1d   :  { %2506 = vmatprep.subr.mxu1 %v2878_v40  ;;  %p2856_p11 = por %p2855_p10, %p2854_p9 }
  0x1f   :  { %p2857_p12 = pnand %p2856_p11, %p2850_p8 }
  0xa2   :  { %v60_v14 = vpop.xlane.xlu0 %59 }
  0xa3   :  { %v65_v15 = vmul.f32 0.03125, %v60_v14 }
  0xa4   :  { %v71_v16 = vpop.xlane.xlu1 %70 }
  0xa5   :  { %v77_v17 = vmul.f32 %v65_v15, %v65_v15  ;;  %v75_v18 = vmul.f32 0.03125, %v71_v16  ;;  %v81_v28 = vsub.f32 %v2962_v0, %v65_v15 }
  0xa6   :  { %v63_v19 = vpop.xlane.xlu0 %62 }
  0xa7   :  { %v79_v20 = vsub.f32 %v75_v18, %v77_v17  ;;  %v66_v21 = vmul.f32 0.03125, %v63_v19 }
  0xa8   :  { %v74_v22 = vpop.xlane.xlu1 %73 }
  0xa9   :  { %v83_v23 = vadd.f32 1e-05, %v79_v20  ;;  %v78_v24 = vmul.f32 %v66_v21, %v66_v21  ;;  %v76_v25 = vmul.f32 0.03125, %v74_v22  ;;  %v82_v33 = vsub.f32 %v2964_v1, %v66_v21 }
  0xab   :  { %2771 = vrsqrt.f32 %v83_v23  ;;  %v80_v26 = vsub.f32 %v76_v25, %v78_v24 }
  0xad   :  { %v84_v27 = vadd.f32 1e-05, %v80_v26 }
  0xaf   :  { %2773 = vrsqrt.f32 %v84_v27 }
  0xb5   :  { %v2772_v29 = vpop.eup %2771 }
  0xb6   :  { %v87_v31 = vmul.f32 %v2772_v29, %v81_v28 }
  0xb8   :  { %v93_v34 = vmul.f32 %v2335_v30, %v87_v31 }
  0xb9   :  { %v2774_v35 = vpop.eup %2773 }
  0xba   :  { %v88_v36 = vmul.f32 %v2774_v35, %v82_v33  ;;  %v99_v37 = vadd.f32 %v2336_v32, %v93_v34 }
  0xbc   :  { %v94_v38 = vmul.f32 %v2335_v30, %v88_v36  ;;  %2503 = vmatprep.mubr.msk.f32.mxu1 %vm57_vm0, %v99_v37 }
  0xbe   :  { %v100_v39 = vadd.f32 %v2336_v32, %v94_v38 }
  0xc0   :  { %2504 = vmatmul.mubr.msk.f32.vlgmr.msra.gmra.mrb[0].mxu1 %vm57_vm0, %v100_v39  ;;  %v856_v39 = vld [vmem:[%s3378_s4] sm:$0xff] }
  0xc1   :  { %2508 = vmatprep.mubr.msk.f32.mxu1 %vm2879_vm1, %v2878_v40 }
 0x193   :  { %v3004_v41 = vpop.f32.mrb[0].mxu1 }
 0x194   :  { %265 = vrot.lane.b32.xlu1 %v3004_v41, %s2880_s23  ;;  %v3008_v42 = vpop.f32.mrb[1].mxu1 }
 0x195   :  { %187 = vrot.lane.b32.xlu0 %v3008_v42, %s2880_s23 }
 0x206   :  { %v266_v44 = vpop.permute.xlu1 %265 }
 0x207   :  { %v188_v43 = vpop.permute.xlu0 %187 }
 0x208   :  { %2507 = vmatpush3.xpose.msk.msra.mxu1 %vm189_vm2, %v188_v43  ;;  %v858_v43 = vld [vmem:[%s3378_s4 + $0x10] sm:$0xff] }
 0x209   :  { %2511 = vmatprep.subr.mxu1 %v2878_v40 }
 0x20b   :  { %2509 = vmatmul.mubr.msk.f32.vlgmr.msra.gmra.mrb[2].mxu1 %vm189_vm2, %v3008_v42 }
 0x20c   :  { %2512 = vmatpush3.xpose.msk.msra.mxu1 %vm189_vm2, %v266_v44  ;;  %2513 = vmatprep.mubr.msk.f32.mxu1 %vm2879_vm1, %v2878_v40  ;;  %v859_v44 = vld [vmem:[%s3378_s4 + $0x18] sm:$0xff] }
 0x20d   :  { %2521 = vmatprep.subr.mxu1 %v2878_v40 }
 0x20f   :  { %2514 = vmatmul.mubr.msk.f32.vlgmr.msra.gmra.mrb[4].mxu1 %vm189_vm2, %v3004_v41 }
 0x210   :  { %2523 = vmatprep.mubr.msk.f32.mxu1 %vm2879_vm1, %v2878_v40 }
 0x2de   :  { %v260_v45 = vpop.f32.mrb[2].mxu1 }
 0x2df   :  { %v2510_v46 = vpop.f32.mrb[3].mxu1  ;;  %v342_v47 = vsel %vm341_vm3, %v260_v45, -inf }
 0x2e0   :  { %343 = vmax.xlane.f32.xlu1 %v342_v47 }
 0x2e2   :  { %v337_v48 = vpop.f32.mrb[4].mxu1 }
 0x2e3   :  { %v2515_v49 = vpop.f32.mrb[5].mxu1  ;;  %v345_v50 = vsel %vm341_vm3, %v337_v48, -inf }
 0x2e4   :  { %346 = vmax.xlane.f32.xlu0 %v345_v50 }
 0x2f1   :  { %440 = vrot.lane.b32.xlu1 %v3004_v41, %s2881_s24 }
 0x2f5   :  { %518 = vrot.lane.b32.xlu1 %v3008_v42, %s2882_s25 }
 0x2f9   :  { %596 = vrot.lane.b32.xlu1 %v3004_v41, %s2882_s25 }
 0x2fa   :  { %364 = vrot.lane.b32.xlu0 %v3008_v42, %s2881_s24 }
 0x36d   :  { %v344_v51 = vpop.xlane.xlu1 %343 }
 0x36e   :  { %v348_v52 = vsub.f32 %v260_v45, %v344_v51  ;;  %v2691_v45 = vpack.c.bf16 %v859_v44, %v858_v43  ;;  %v1094_v43 = vld [vmem:[%s3383_s9 + $0x38] sm:$0xff] }
 0x370   :  { %v350_v53 = vmul.f32 1.442695, %v348_v52 }
 0x371   :  { %v441_v54 = vpop.permute.xlu1 %440  ;;  %v347_v55 = vpop.xlane.xlu0 %346 }
 0x372   :  { %2775 = vpow2.f32 %v350_v53  ;;  %v349_v56 = vsub.f32 %v337_v48, %v347_v55  ;;  %2522 = vmatpush3.msra.mxu1 %v441_v54 }
 0x373   :  { %2531 = vmatprep.subr.mxu1 %v2878_v40 }
 0x374   :  { %v352_v57 = vmul.f32 1.442695, %v349_v56 }
 0x375   :  { %v365_v58 = vpop.permute.xlu0 %364  ;;  %v519_v63 = vpop.permute.xlu1 %518 }
 0x376   :  { %2777 = vpow2.f32 %v352_v57  ;;  %2517 = vmatpush3.msra.mxu0 %v365_v58 }
 0x377   :  { %2526 = vmatprep.subr.mxu0 %v2878_v40 }
 0x379   :  { %v597_v2 = vpop.permute.xlu1 %596 }
 0x37c   :  { %v2776_v59 = vpop.eup %2775 }
 0x37d   :  { %v354_v60 = vsel %vm341_vm3, %v2776_v59, 0.0 }
 0x37e   :  { %355 = vadd.xlane.f32.xlu0 %v354_v60 }
 0x380   :  { %v2778_v61 = vpop.eup %2777 }
 0x381   :  { %v357_v62 = vsel %vm341_vm3, %v2778_v61, 0.0 }
 0x382   :  { %358 = vadd.xlane.f32.xlu1 %v357_v62  ;;  %v987_v62 = vld [vmem:[%s3381_s7] sm:$0xff] }
 0x393   :  { %594 = vrot.lane.b32.xlu1 %v3004_v41, %s2883_s26 }
 0x394   :  { %516 = vrot.lane.b32.xlu0 %v3008_v42, %s2883_s26 }
 0x40b   :  { %v356_v3 = vpop.xlane.xlu0 %355 }
 0x40c   :  { %2779 = vrcp.f32 %v356_v3 }
 0x40f   :  { %v359_v4 = vpop.xlane.xlu1 %358  ;;  %v517_v9 = vpop.permute.xlu0 %516 }
 0x410   :  { %2781 = vrcp.f32 %v359_v4  ;;  %v990_v4 = vld [vmem:[%s3381_s7 + $0x18] sm:$0xff] }
 0x413   :  { %v595_v10 = vpop.permute.xlu1 %594 }
 0x416   :  { %v2780_v5 = vpop.eup %2779 }
 0x417   :  { %v362_v6 = vmul.f32 %v2780_v5, %v2776_v59 }
 0x419   :  { %2519 = vmatmul.mubr.msk.f32.vlgmr.msra.gmra.mrb[0].mxu0 %vm341_vm3, %v362_v6 }
 0x41a   :  { %v2782_v7 = vpop.eup %2781  ;;  %2527 = vmatpush3.xpose.msk.msra.mxu0 %vm189_vm2, %v519_v63  ;;  %2528 = vmatprep.mubr.msk.f32.mxu0 %vm2879_vm1, %v2878_v40  ;;  %v988_v63 = vld [vmem:[%s3381_s7 + $0x8] sm:$0xff] }
 0x41b   :  { %v363_v8 = vmul.f32 %v2782_v7, %v2778_v61  ;;  %2536 = vmatprep.subr.mxu0 %v2878_v40  ;;  %v2695_v3 = vpack.c.bf16 %v988_v63, %v987_v62 }
 0x41d   :  { %2524 = vmatmul.mubr.msk.f32.vlgmr.msra.gmra.mrb[6].mxu1 %vm341_vm3, %v363_v8  ;;  %2529 = vmatmul.mubr.msk.f32.vlgmr.msra.gmra.mrb[2].mxu0 %vm189_vm2, %v517_v9 }
 0x41e   :  { %2532 = vmatpush3.xpose.msk.msra.mxu1 %vm189_vm2, %v597_v2  ;;  %2533 = vmatprep.mubr.msk.f32.mxu1 %vm2879_vm1, %v2878_v40  ;;  %v989_v2 = vld [vmem:[%s3381_s7 + $0x10] sm:$0xff] }
 0x41f   :  { %2541 = vmatprep.subr.mxu1 %v2878_v40  ;;  %2538 = vmatprep.mubr.msk.f32.mxu0 %vm2879_vm1, %v2878_v40  ;;  %v2699_v5 = vpack.c.bf16 %v990_v4, %v989_v2 }
 0x421   :  { %2534 = vmatmul.mubr.msk.f32.vlgmr.msra.gmra.mrb[8].mxu1 %vm189_vm2, %v595_v10 }
 0x422   :  { %2543 = vmatprep.mubr.msk.f32.mxu1 %vm2879_vm1, %v2878_v40 }
 0x4ec   :  { %v436_v11 = vpop.f32.mrb[0].mxu0 }
 0x4ed   :  { %v2520_v12 = vpop.f32.mrb[1].mxu0 }
 0x4f0   :  { %v3058_v13 = vpop.f32.mrb[6].mxu1  ;;  %v590_v14 = vpop.f32.mrb[2].mxu0 }
 0x4f1   :  { %v2525_v15 = vpop.f32.mrb[7].mxu1  ;;  %v2530_v16 = vpop.f32.mrb[3].mxu0  ;;  %v672_v17 = vsel %vm341_vm3, %v590_v14, -inf }
 0x4f2   :  { %673 = vmax.xlane.f32.xlu0 %v672_v17 }
 0x4f4   :  { %v668_v18 = vpop.f32.mrb[8].mxu1 }
 0x4f5   :  { %v2535_v19 = vpop.f32.mrb[9].mxu1  ;;  %v675_v20 = vsel %vm341_vm3, %v668_v18, -inf }
 0x4f6   :  { %676 = vmax.xlane.f32.xlu1 %v675_v20 }
 0x507   :  { %770 = vrot.lane.b32.xlu1 %v3004_v41, %s2884_s29  ;;  %v857_v41 = vld [vmem:[%s3378_s4 + $0x8] sm:$0xff] }
 0x57f   :  { %v674_v21 = vpop.xlane.xlu0 %673 }
 0x580   :  { %v678_v22 = vsub.f32 %v590_v14, %v674_v21 }
 0x582   :  { %v680_v23 = vmul.f32 1.442695, %v678_v22  ;;  %v2353_v22 = vld [vmem:[%s3379_s5] ss:$0 sm:$0xff] }
 0x583   :  { %v677_v24 = vpop.xlane.xlu1 %676 }
 0x584   :  { %2783 = vpow2.f32 %v680_v23  ;;  %v679_v25 = vsub.f32 %v668_v18, %v677_v24  ;;  %v2354_v24 = vld [vmem:[%s3380_s6] ss:$0 sm:$0xff] }
 0x586   :  { %v682_v26 = vmul.f32 1.442695, %v679_v25 }
 0x587   :  { %v771_v27 = vpop.permute.xlu1 %770 }
 0x588   :  { %2785 = vpow2.f32 %v682_v26  ;;  %2542 = vmatpush3.msra.mxu1 %v771_v27 }
 0x589   :  { %2696 = vmatprep.subr.bf16.mxu1 %v2695_v3 }
 0x58e   :  { %v2784_v28 = vpop.eup %2783 }
 0x58f   :  { %v684_v29 = vsel %vm341_vm3, %v2784_v28, 0.0 }
 0x590   :  { %685 = vadd.xlane.f32.xlu0 %v684_v29 }
 0x592   :  { %v2786_v30 = vpop.eup %2785 }
 0x593   :  { %v687_v31 = vsel %vm341_vm3, %v2786_v30, 0.0 }
 0x594   :  { %688 = vadd.xlane.f32.xlu0 %v687_v31 }
 0x5aa   :  { %694 = vrot.lane.b32.xlu0 %v3008_v42, %s2884_s29  ;;  %v2687_v42 = vpack.c.bf16 %v857_v41, %v856_v39  ;;  %v1092_v39 = vld [vmem:[%s3383_s9 + $0x28] sm:$0xff] }
 0x61d   :  { %v686_v32 = vpop.xlane.xlu0 %685 }
 0x61e   :  { %2787 = vrcp.f32 %v686_v32  ;;  %v1087_v32 = vld [vmem:[%s3383_s9] sm:$0xff] }
 0x621   :  { %v689_v33 = vpop.xlane.xlu0 %688 }
 0x622   :  { %2789 = vrcp.f32 %v689_v33  ;;  %v1088_v33 = vld [vmem:[%s3383_s9 + $0x8] sm:$0xff] }
 0x625   :  { %v695_v34 = vpop.permute.xlu0 %694 }
 0x626   :  { %2537 = vmatpush3.msra.mxu0 %v695_v34  ;;  %v2703_v34 = vpack.c.bf16 %v1088_v33, %v1087_v32  ;;  %v2361_v32 = vld [vmem:[%s3375_s1 + $0x1] ss:$0 sm:$0xff] }
 0x627   :  { %2688 = vmatprep.subr.bf16.mxu0 %v2687_v42 }
 0x628   :  { %v2788_v35 = vpop.eup %2787 }
 0x629   :  { %v692_v36 = vmul.f32 %v2788_v35, %v2784_v28  ;;  %v1089_v35 = vld [vmem:[%s3383_s9 + $0x10] sm:$0xff] }
 0x62b   :  { %2539 = vmatmul.mubr.msk.f32.vlgmr.msra.gmra.mrb[4].mxu0 %vm341_vm3, %v692_v36  ;;  %v1090_v36 = vld [vmem:[%s3383_s9 + $0x18] sm:$0xff] }
 0x62c   :  { %v2790_v37 = vpop.eup %2789  ;;  %2690 = vmatpush3.bf16.msra.mxu0 %v2687_v42  ;;  %v1093_v42 = vld [vmem:[%s3383_s9 + $0x30] sm:$0xff] }
 0x62d   :  { %v693_v38 = vmul.f32 %v2790_v37, %v2786_v30  ;;  %2692 = vmatprep.subr.bf16.mxu0 %v2691_v45  ;;  %v2707_v37 = vpack.c.bf16 %v1090_v36, %v1089_v35  ;;  %v2715_v44 = vpack.c.bf16 %v1094_v43, %v1093_v42  ;;  %v2362_v36 = vld [vmem:[%s3376_s2 + $0x1] ss:$0 sm:$0xff] }
 0x62f   :  { %2544 = vmatmul.mubr.msk.f32.vlgmr.msra.gmra.mrb[10].mxu1 %vm341_vm3, %v693_v38  ;;  %v1091_v38 = vld [vmem:[%s3383_s9 + $0x20] sm:$0xff] }
 0x630   :  { %2694 = vmatpush3.bf16.msra.mxu0 %v2691_v45  ;;  %2698 = vmatpush3.bf16.msra.mxu1 %v2695_v3  ;;  %v2711_v41 = vpack.c.bf16 %v1092_v39, %v1091_v38  ;;  %v2355_v45 = vld [vmem:[%s3382_s8] ss:$0 sm:$0xff] }
 0x631   :  { %2700 = vmatprep.subr.bf16.mxu1 %v2699_v5  ;;  %2704 = vmatprep.subr.bf16.mxu0 %v2703_v34 }
 0x634   :  { %2702 = vmatpush3.bf16.msra.mxu1 %v2699_v5 }
 0x6fe   :  { %v766_v46 = vpop.f32.mrb[4].mxu0 }
 0x6ff   :  { %848 = vrot.lane.b32.xlu1 %v766_v46, %s2885_s18  ;;  %v2540_v47 = vpop.f32.mrb[5].mxu0 }
 0x702   :  { %v842_v48 = vpop.f32.mrb[10].mxu1 }
 0x703   :  { %850 = vrot.lane.b32.xlu1 %v842_v48, %s2885_s18  ;;  %v2545_v49 = vpop.f32.mrb[11].mxu1 }
 0x771   :  { %v849_v50 = vpop.permute.xlu1 %848 }
 0x772   :  { %v854_v51 = vsel %vm189_vm2, %v436_v11, %v849_v50 }
 0x773   :  { %2554 = vmatprep.mubr.msk.f32.mxu0 %vm57_vm0, %v854_v51 }
 0x775   :  { %v851_v52 = vpop.permute.xlu1 %850 }
 0x776   :  { %v855_v53 = vsel %vm189_vm2, %v3058_v13, %v851_v52 }
 0x777   :  { %2555 = vmatmul.mubr.msk.f32.vlgmr.msra.gmra.mrb[6].mxu0 %vm57_vm0, %v855_v53 }
 0x778   :  { %2706 = vmatpush3.bf16.msra.mxu0 %v2703_v34 }
 0x779   :  { %2708 = vmatprep.subr.bf16.mxu0 %v2707_v37 }
 0x77c   :  { %2710 = vmatpush3.bf16.msra.mxu0 %v2707_v37 }
 0x77d   :  { %2712 = vmatprep.subr.bf16.mxu0 %v2711_v41 }
 0x780   :  { %2714 = vmatpush3.bf16.msra.mxu0 %v2711_v41 }
 0x781   :  { %2716 = vmatprep.subr.bf16.mxu0 %v2715_v44 }
 0x784   :  { %2718 = vmatpush3.bf16.msra.mxu0 %v2715_v44 }
 0x785   :  { %2608 = vmatprep.subr.mxu0 %v2878_v40 }
 0x84a   :  { %v2556_v54 = vpop.f32.mrb[6].mxu0 }
 0x84b   :  { %v3090_v55 = vadd.f32 %v2556_v54, %v2964_v1  ;;  %v932_v56 = vpop.f32.mrb[7].mxu0 }
 0x84c   :  { %v3093_v57 = vadd.f32 %v932_v56, %v2962_v0 }
 0x84d   :  { %v948_v58 = vsel %vm57_vm0, %v3090_v55, 0.0  ;;  %v954_v1 = vmul.f32 %v3090_v55, %v3090_v55 }
 0x84e   :  { %949 = vadd.xlane.f32.xlu1 %v948_v58  ;;  %v945_v59 = vsel %vm57_vm0, %v3093_v57, 0.0  ;;  %v953_v60 = vmul.f32 %v3093_v57, %v3093_v57 }
 0x84f   :  { %946 = vadd.xlane.f32.xlu0 %v945_v59  ;;  %v958_v0 = vsel %vm57_vm0, %v954_v1, 0.0 }
 0x850   :  { %v955_v61 = vsel %vm57_vm0, %v953_v60, 0.0 }
 0x853   :  { %956 = vadd.xlane.f32.xlu0 %v955_v61 }
 0x857   :  { %959 = vadd.xlane.f32.xlu0 %v958_v0  ;;  %v2360_v0 = vld [vmem:[%s3384_s10] ss:$0 sm:$0xff] }
 0x8db   :  { %v950_v8 = vpop.xlane.xlu1 %949 }
 0x8dc   :  { %v947_v6 = vpop.xlane.xlu0 %946  ;;  %v952_v10 = vmul.f32 0.03125, %v950_v8 }
 0x8dd   :  { %v951_v7 = vmul.f32 0.03125, %v947_v6 }
 0x8de   :  { %v964_v15 = vmul.f32 %v952_v10, %v952_v10  ;;  %v968_v25 = vsub.f32 %v3090_v55, %v952_v10  ;;  %v2364_v10 = vld [vmem:[%s3377_s3 + $0x28] sm:$0xff] }
 0x8df   :  { %v963_v11 = vmul.f32 %v951_v7, %v951_v7  ;;  %v967_v20 = vsub.f32 %v3093_v57, %v951_v7 }
 0x8e0   :  { %v957_v9 = vpop.xlane.xlu0 %956 }
 0x8e1   :  { %v961_v12 = vmul.f32 0.03125, %v957_v9  ;;  %v2363_v9 = vld [vmem:[%s3377_s3 + $0x20] sm:$0xff] }
 0x8e3   :  { %v965_v13 = vsub.f32 %v961_v12, %v963_v11  ;;  %v2365_v11 = vld [vmem:[%s3377_s3 + $0x30] sm:$0xff]  ;;  %v2719_v12 = vpack.c.bf16 %v2364_v10, %v2363_v9 }
 0x8e4   :  { %v960_v14 = vpop.xlane.xlu0 %959 }
 0x8e5   :  { %v969_v16 = vadd.f32 1e-05, %v965_v13  ;;  %v962_v17 = vmul.f32 0.03125, %v960_v14  ;;  %v2366_v13 = vld [vmem:[%s3377_s3 + $0x38] sm:$0xff]  ;;  %2720 = vmatprep.subr.bf16.mxu1 %v2719_v12 }
 0x8e6   :  { %v2723_v14 = vpack.c.bf16 %v2366_v13, %v2365_v11 }
 0x8e7   :  { %2791 = vrsqrt.f32 %v969_v16  ;;  %v966_v18 = vsub.f32 %v962_v17, %v964_v15 }
 0x8e9   :  { %v970_v19 = vadd.f32 1e-05, %v966_v18 }
 0x8eb   :  { %2793 = vrsqrt.f32 %v970_v19 }
 0x8f1   :  { %v2792_v21 = vpop.eup %2791 }
 0x8f2   :  { %v973_v23 = vmul.f32 %v2792_v21, %v967_v20 }
 0x8f4   :  { %v979_v26 = vmul.f32 %v2353_v22, %v973_v23 }
 0x8f5   :  { %v2794_v27 = vpop.eup %2793 }
 0x8f6   :  { %v974_v28 = vmul.f32 %v2794_v27, %v968_v25  ;;  %v985_v29 = vadd.f32 %v2354_v24, %v979_v26 }
 0x8f8   :  { %v980_v30 = vmul.f32 %v2353_v22, %v974_v28  ;;  %2565 = vmatprep.mubr.msk.f32.mxu1 %vm57_vm0, %v985_v29 }
 0x8fa   :  { %v986_v31 = vadd.f32 %v2354_v24, %v980_v30 }
 0x8fc   :  { %2566 = vmatmul.mubr.msk.f32.vlgmr.msra.gmra.mrb[12].mxu1 %vm57_vm0, %v986_v31 }
 0x8fd   :  { %2722 = vmatpush3.bf16.msra.mxu1 %v2719_v12 }
 0x8fe   :  { %2724 = vmatprep.subr.bf16.mxu1 %v2723_v14 }
 0x901   :  { %2726 = vmatpush3.bf16.msra.mxu1 %v2723_v14 }
 0x902   :  { %2598 = vmatprep.subr.mxu1 %v2878_v40 }
 0x9cf   :  { %v2567_v46 = vpop.f32.mrb[12].mxu1 }
 0x9d0   :  { %v1074_v47 = vadd.f32 %v2567_v46, %v2355_v45  ;;  %v1068_v48 = vpop.f32.mrb[13].mxu1 }
 0x9d1   :  { %v1069_v49 = vadd.f32 %v2355_v45, %v1068_v48 }
 0x9d2   :  { %v1080_v50 = vmul.f32 0.70710677, %v1074_v47  ;;  %v1078_v59 = vmul.f32 0.5, %v1074_v47 }
 0x9d3   :  { %v1079_v51 = vmul.f32 0.70710677, %v1069_v49  ;;  %v1077_v56 = vmul.f32 0.5, %v1069_v49 }
 0x9d4   :  { %2795 = verf.f32 %v1080_v50 }
 0x9d5   :  { %2797 = verf.f32 %v1079_v51 }
 0x9de   :  { %v2796_v52 = vpop.eup %2795 }
 0x9df   :  { %v2798_v53 = vpop.eup %2797  ;;  %v1084_v54 = vadd.f32 1.0, %v2796_v52 }
 0x9e0   :  { %v1083_v58 = vadd.f32 1.0, %v2798_v53 }
 0x9e1   :  { %v1086_v61 = vmul.f32 %v1084_v54, %v1078_v59 }
 0x9e2   :  { %v1085_v60 = vmul.f32 %v1083_v58, %v1077_v56 }
 0x9e4   :  { %2584 = vmatprep.mubr.msk.f32.mxu0 %vm1095_vm4, %v1085_v60 }
 0x9e5   :  { %2585 = vmatmul.mubr.msk.f32.vlgmr.msra.gmra.mrb[8].mxu0 %vm1095_vm4, %v1086_v61 }
 0x9e6   :  { %2610 = vmatprep.mubr.msk.f32.mxu0 %vm2879_vm1, %v2878_v40 }
 0xab8   :  { %v2586_v1 = vpop.f32.mrb[8].mxu0 }
 0xab9   :  { %v1178_v62 = vadd.f32 %v2586_v1, %v3090_v55  ;;  %v1168_v63 = vpop.f32.mrb[9].mxu0 }
 0xaba   :  { %v1177_v2 = vadd.f32 %v1168_v63, %v3093_v57 }
 0xabb   :  { %v3164_v3 = vadd.f32 %v2360_v0, %v1178_v62 }
 0xabc   :  { %v3166_v4 = vadd.f32 %v2360_v0, %v1177_v2 }
 0xabd   :  { %v1191_v5 = vsel %vm57_vm0, %v3164_v3, 0.0  ;;  %v1197_v6 = vmul.f32 %v3164_v3, %v3164_v3 }
 0xabe   :  { %1192 = vadd.xlane.f32.xlu1 %v1191_v5  ;;  %v1188_v7 = vsel %vm57_vm0, %v3166_v4, 0.0  ;;  %v1196_v55 = vmul.f32 %v3166_v4, %v3166_v4 }
 0xabf   :  { %1189 = vadd.xlane.f32.xlu0 %v1188_v7  ;;  %v1201_v57 = vsel %vm57_vm0, %v1197_v6, 0.0 }
 0xac0   :  { %v1198_v8 = vsel %vm57_vm0, %v1196_v55, 0.0 }
 0xac2   :  { %1202 = vadd.xlane.f32.xlu1 %v1201_v57 }
 0xac3   :  { %1199 = vadd.xlane.f32.xlu0 %v1198_v8 }
 0xb4b   :  { %v1193_v15 = vpop.xlane.xlu1 %1192 }
 0xb4c   :  { %v1195_v16 = vmul.f32 0.03125, %v1193_v15  ;;  %v1190_v17 = vpop.xlane.xlu0 %1189 }
 0xb4d   :  { %v1194_v18 = vmul.f32 0.03125, %v1190_v17 }
 0xb4e   :  { %v1207_v20 = vmul.f32 %v1195_v16, %v1195_v16  ;;  %v1211_v29 = vsub.f32 %v3164_v3, %v1195_v16 }
 0xb4f   :  { %v1203_v19 = vpop.xlane.xlu1 %1202  ;;  %v1206_v23 = vmul.f32 %v1194_v18, %v1194_v18  ;;  %v1210_v31 = vsub.f32 %v3166_v4, %v1194_v18 }
 0xb50   :  { %v1205_v21 = vmul.f32 0.03125, %v1203_v19  ;;  %v1200_v22 = vpop.xlane.xlu0 %1199 }
 0xb51   :  { %v1204_v24 = vmul.f32 0.03125, %v1200_v22 }
 0xb52   :  { %v1209_v25 = vsub.f32 %v1205_v21, %v1207_v20 }
 0xb53   :  { %v1208_v26 = vsub.f32 %v1204_v24, %v1206_v23 }
 0xb54   :  { %v1213_v27 = vadd.f32 1e-05, %v1209_v25 }
 0xb55   :  { %v1212_v28 = vadd.f32 1e-05, %v1208_v26 }
 0xb56   :  { %2799 = vrsqrt.f32 %v1213_v27 }
 0xb57   :  { %2801 = vrsqrt.f32 %v1212_v28 }
 0xb60   :  { %v2800_v30 = vpop.eup %2799 }
 0xb61   :  { %v2802_v33 = vpop.eup %2801  ;;  %v1217_v34 = vmul.f32 %v2800_v30, %v1211_v29 }
 0xb62   :  { %v1216_v35 = vmul.f32 %v2802_v33, %v1210_v31 }
 0xb63   :  { %v1223_v37 = vmul.f32 %v2361_v32, %v1217_v34 }
 0xb64   :  { %v1222_v38 = vmul.f32 %v2361_v32, %v1216_v35 }
 0xb65   :  { %v1229_v41 = vadd.f32 %v2362_v36, %v1223_v37 }
 0xb66   :  { %v1228_v39 = vadd.f32 %v2362_v36, %v1222_v38 }
 0xb68   :  { %2595 = vmatprep.mubr.msk.f32.mxu1 %vm57_vm0, %v1228_v39  ;;  %v2381_v39 = vld [vmem:[%s3378_s4 + $0x20] sm:$0xff] }
 0xb69   :  { %2596 = vmatmul.mubr.msk.f32.vlgmr.msra.gmra.mrb[14].mxu1 %vm57_vm0, %v1229_v41  ;;  %v2382_v41 = vld [vmem:[%s3378_s4 + $0x28] sm:$0xff] }
 0xb6a   :  { %2600 = vmatprep.mubr.msk.f32.mxu1 %vm2879_vm1, %v2878_v40 }
 0xc3c   :  { %v3203_v42 = vpop.f32.mrb[14].mxu1 }
 0xc3d   :  { %1394 = vrot.lane.b32.xlu1 %v3203_v42, %s2880_s23  ;;  %v3207_v43 = vpop.f32.mrb[15].mxu1 }
 0xc3e   :  { %1317 = vrot.lane.b32.xlu0 %v3207_v43, %s2880_s23 }
 0xcaf   :  { %v1395_v45 = vpop.permute.xlu1 %1394 }
 0xcb0   :  { %v1318_v44 = vpop.permute.xlu0 %1317 }
 0xcb1   :  { %2599 = vmatpush3.xpose.msk.msra.mxu1 %vm189_vm2, %v1318_v44  ;;  %v2384_v44 = vld [vmem:[%s3378_s4 + $0x38] sm:$0xff] }
 0xcb2   :  { %2603 = vmatprep.subr.mxu1 %v2878_v40 }
 0xcb4   :  { %2601 = vmatmul.mubr.msk.f32.vlgmr.msra.gmra.mrb[16].mxu1 %vm189_vm2, %v3207_v43 }
 0xcb5   :  { %2604 = vmatpush3.xpose.msk.msra.mxu1 %vm189_vm2, %v1395_v45  ;;  %2605 = vmatprep.mubr.msk.f32.mxu1 %vm2879_vm1, %v2878_v40 }
 0xcb6   :  { %2613 = vmatprep.subr.mxu1 %v2878_v40 }
 0xcb8   :  { %2606 = vmatmul.mubr.msk.f32.vlgmr.msra.gmra.mrb[18].mxu1 %vm189_vm2, %v3203_v42 }
 0xcb9   :  { %2615 = vmatprep.mubr.msk.f32.mxu1 %vm2879_vm1, %v2878_v40 }
 0xd87   :  { %v1389_v46 = vpop.f32.mrb[16].mxu1 }
 0xd88   :  { %v2602_v47 = vpop.f32.mrb[17].mxu1  ;;  %v1470_v48 = vsel %vm341_vm3, %v1389_v46, -inf }
 0xd89   :  { %1471 = vmax.xlane.f32.xlu1 %v1470_v48 }
 0xd8b   :  { %v1466_v49 = vpop.f32.mrb[18].mxu1 }
 0xd8c   :  { %v2607_v50 = vpop.f32.mrb[19].mxu1  ;;  %v1473_v51 = vsel %vm341_vm3, %v1466_v49, -inf }
 0xd8d   :  { %1474 = vmax.xlane.f32.xlu0 %v1473_v51 }
 0xd9a   :  { %1568 = vrot.lane.b32.xlu1 %v3203_v42, %s2881_s24 }
 0xd9e   :  { %1646 = vrot.lane.b32.xlu1 %v3207_v43, %s2882_s25 }
 0xda2   :  { %1724 = vrot.lane.b32.xlu1 %v3203_v42, %s2882_s25 }
 0xda3   :  { %1492 = vrot.lane.b32.xlu0 %v3207_v43, %s2881_s24 }
 0xe16   :  { %v1472_v52 = vpop.xlane.xlu1 %1471 }
 0xe17   :  { %v1476_v53 = vsub.f32 %v1389_v46, %v1472_v52 }
 0xe19   :  { %v1478_v54 = vmul.f32 1.442695, %v1476_v53 }
 0xe1a   :  { %v1569_v56 = vpop.permute.xlu1 %1568  ;;  %v1475_v58 = vpop.xlane.xlu0 %1474 }
 0xe1b   :  { %2803 = vpow2.f32 %v1478_v54  ;;  %v1477_v59 = vsub.f32 %v1466_v49, %v1475_v58  ;;  %2614 = vmatpush3.msra.mxu1 %v1569_v56 }
 0xe1c   :  { %2623 = vmatprep.subr.mxu1 %v2878_v40 }
 0xe1d   :  { %v1480_v60 = vmul.f32 1.442695, %v1477_v59 }
 0xe1e   :  { %v1493_v61 = vpop.permute.xlu0 %1492  ;;  %v1647_v2 = vpop.permute.xlu1 %1646 }
 0xe1f   :  { %2805 = vpow2.f32 %v1480_v60  ;;  %2609 = vmatpush3.msra.mxu0 %v1493_v61 }
 0xe20   :  { %2618 = vmatprep.subr.mxu0 %v2878_v40 }
 0xe22   :  { %v1725_v5 = vpop.permute.xlu1 %1724 }
 0xe25   :  { %v2804_v1 = vpop.eup %2803 }
 0xe26   :  { %v1482_v0 = vsel %vm341_vm3, %v2804_v1, 0.0 }
 0xe27   :  { %1483 = vadd.xlane.f32.xlu0 %v1482_v0 }
 0xe29   :  { %v2806_v62 = vpop.eup %2805 }
 0xe2a   :  { %v1485_v63 = vsel %vm341_vm3, %v2806_v62, 0.0 }
 0xe2b   :  { %1486 = vadd.xlane.f32.xlu1 %v1485_v63  ;;  %v2390_v63 = vld [vmem:[%s3381_s7 + $0x28] sm:$0xff] }
 0xe3c   :  { %1722 = vrot.lane.b32.xlu1 %v3203_v42, %s2883_s26 }
 0xe3d   :  { %1644 = vrot.lane.b32.xlu0 %v3207_v43, %s2883_s26 }
 0xeb4   :  { %v1484_v6 = vpop.xlane.xlu0 %1483 }
 0xeb5   :  { %2807 = vrcp.f32 %v1484_v6  ;;  %v2392_v6 = vld [vmem:[%s3381_s7 + $0x38] sm:$0xff] }
 0xeb8   :  { %v1487_v7 = vpop.xlane.xlu1 %1486  ;;  %v1645_v10 = vpop.permute.xlu0 %1644 }
 0xeb9   :  { %2809 = vrcp.f32 %v1487_v7 }
 0xebc   :  { %v1723_v11 = vpop.permute.xlu1 %1722 }
 0xebf   :  { %v2808_v55 = vpop.eup %2807 }
 0xec0   :  { %v1490_v57 = vmul.f32 %v2808_v55, %v2804_v1 }
 0xec2   :  { %2611 = vmatmul.mubr.msk.f32.vlgmr.msra.gmra.mrb[10].mxu0 %vm341_vm3, %v1490_v57 }
 0xec3   :  { %v2810_v8 = vpop.eup %2809  ;;  %2619 = vmatpush3.xpose.msk.msra.mxu0 %vm189_vm2, %v1647_v2  ;;  %2620 = vmatprep.mubr.msk.f32.mxu0 %vm2879_vm1, %v2878_v40  ;;  %v2391_v2 = vld [vmem:[%s3381_s7 + $0x30] sm:$0xff] }
 0xec4   :  { %v1491_v9 = vmul.f32 %v2810_v8, %v2806_v62  ;;  %2628 = vmatprep.subr.mxu0 %v2878_v40  ;;  %v2389_v62 = vld [vmem:[%s3381_s7 + $0x20] sm:$0xff]  ;;  %v2739_v7 = vpack.c.bf16 %v2392_v6, %v2391_v2 }
 0xec6   :  { %2616 = vmatmul.mubr.msk.f32.vlgmr.msra.gmra.mrb[20].mxu1 %vm341_vm3, %v1491_v9  ;;  %2621 = vmatmul.mubr.msk.f32.vlgmr.msra.gmra.mrb[12].mxu0 %vm189_vm2, %v1645_v10 }
 0xec7   :  { %2624 = vmatpush3.xpose.msk.msra.mxu1 %vm189_vm2, %v1725_v5  ;;  %2625 = vmatprep.mubr.msk.f32.mxu1 %vm2879_vm1, %v2878_v40  ;;  %v2735_v5 = vpack.c.bf16 %v2390_v63, %v2389_v62 }
 0xec8   :  { %2633 = vmatprep.subr.mxu1 %v2878_v40  ;;  %2630 = vmatprep.mubr.msk.f32.mxu0 %vm2879_vm1, %v2878_v40 }
 0xeca   :  { %2626 = vmatmul.mubr.msk.f32.vlgmr.msra.gmra.mrb[22].mxu1 %vm189_vm2, %v1723_v11 }
 0xecb   :  { %2635 = vmatprep.mubr.msk.f32.mxu1 %vm2879_vm1, %v2878_v40 }
 0xf95   :  { %v1564_v12 = vpop.f32.mrb[10].mxu0 }
 0xf96   :  { %v2612_v13 = vpop.f32.mrb[11].mxu0 }
 0xf99   :  { %v1640_v14 = vpop.f32.mrb[20].mxu1  ;;  %v1718_v15 = vpop.f32.mrb[12].mxu0 }
 0xf9a   :  { %v2617_v16 = vpop.f32.mrb[21].mxu1  ;;  %v2622_v17 = vpop.f32.mrb[13].mxu0  ;;  %v1800_v18 = vsel %vm341_vm3, %v1718_v15, -inf }
 0xf9b   :  { %1801 = vmax.xlane.f32.xlu0 %v1800_v18 }
 0xf9d   :  { %v1796_v19 = vpop.f32.mrb[22].mxu1 }
 0xf9e   :  { %v2627_v20 = vpop.f32.mrb[23].mxu1  ;;  %v1803_v21 = vsel %vm341_vm3, %v1796_v19, -inf }
 0xf9f   :  { %1804 = vmax.xlane.f32.xlu1 %v1803_v21 }
 0xfb0   :  { %1898 = vrot.lane.b32.xlu1 %v3203_v42, %s2884_s29  ;;  %v2727_v42 = vpack.c.bf16 %v2382_v41, %v2381_v39  ;;  %v2402_v41 = vld [vmem:[%s3383_s9 + $0x70] sm:$0xff] }
0x1028   :  { %v1802_v22 = vpop.xlane.xlu0 %1801 }
0x1029   :  { %v1806_v23 = vsub.f32 %v1718_v15, %v1802_v22  ;;  %v2387_v22 = vld [vmem:[%s3379_s5 + $0x1] ss:$0 sm:$0xff] }
0x102b   :  { %v1808_v40 = vmul.f32 1.442695, %v1806_v23 }
0x102c   :  { %v1805_v24 = vpop.xlane.xlu1 %1804 }
0x102d   :  { %2811 = vpow2.f32 %v1808_v40  ;;  %v1807_v25 = vsub.f32 %v1796_v19, %v1805_v24  ;;  %v2388_v40 = vld [vmem:[%s3380_s6 + $0x1] ss:$0 sm:$0xff] }
0x102f   :  { %v1810_v26 = vmul.f32 1.442695, %v1807_v25 }
0x1030   :  { %v1899_v27 = vpop.permute.xlu1 %1898 }
0x1031   :  { %2813 = vpow2.f32 %v1810_v26  ;;  %2634 = vmatpush3.msra.mxu1 %v1899_v27 }
0x1032   :  { %2736 = vmatprep.subr.bf16.mxu1 %v2735_v5 }
0x1037   :  { %v2812_v28 = vpop.eup %2811 }
0x1038   :  { %v1812_v29 = vsel %vm341_vm3, %v2812_v28, 0.0 }
0x1039   :  { %1813 = vadd.xlane.f32.xlu0 %v1812_v29 }
0x103b   :  { %v2814_v30 = vpop.eup %2813 }
0x103c   :  { %v1815_v31 = vsel %vm341_vm3, %v2814_v30, 0.0 }
0x103d   :  { %1816 = vadd.xlane.f32.xlu0 %v1815_v31  ;;  %v2396_v31 = vld [vmem:[%s3383_s9 + $0x40] sm:$0xff] }
0x1053   :  { %1822 = vrot.lane.b32.xlu0 %v3207_v43, %s2884_s29  ;;  %v2383_v43 = vld [vmem:[%s3378_s4 + $0x30] sm:$0xff] }
0x1054   :  { %v2731_v45 = vpack.c.bf16 %v2384_v44, %v2383_v43  ;;  %v2393_v44 = vld [vmem:[%s3382_s8 + $0x1] ss:$0 sm:$0xff] }
0x10c6   :  { %v1814_v32 = vpop.xlane.xlu0 %1813 }
0x10c7   :  { %2815 = vrcp.f32 %v1814_v32  ;;  %v2397_v32 = vld [vmem:[%s3383_s9 + $0x48] sm:$0xff] }
0x10ca   :  { %v1817_v33 = vpop.xlane.xlu0 %1816 }
0x10cb   :  { %2817 = vrcp.f32 %v1817_v33  ;;  %v2743_v33 = vpack.c.bf16 %v2397_v32, %v2396_v31 }
0x10ce   :  { %v1823_v34 = vpop.permute.xlu0 %1822 }
0x10cf   :  { %2629 = vmatpush3.msra.mxu0 %v1823_v34  ;;  %v2398_v34 = vld [vmem:[%s3383_s9 + $0x50] sm:$0xff] }
0x10d0   :  { %2728 = vmatprep.subr.bf16.mxu0 %v2727_v42 }
0x10d1   :  { %v2816_v35 = vpop.eup %2815 }
0x10d2   :  { %v1820_v36 = vmul.f32 %v2816_v35, %v2812_v28  ;;  %v2399_v35 = vld [vmem:[%s3383_s9 + $0x58] sm:$0xff] }
0x10d4   :  { %2631 = vmatmul.mubr.msk.f32.vlgmr.msra.gmra.mrb[14].mxu0 %vm341_vm3, %v1820_v36  ;;  %v2747_v36 = vpack.c.bf16 %v2399_v35, %v2398_v34 }
0x10d5   :  { %v2818_v37 = vpop.eup %2817  ;;  %2730 = vmatpush3.bf16.msra.mxu0 %v2727_v42  ;;  %v2403_v42 = vld [vmem:[%s3383_s9 + $0x78] sm:$0xff] }
0x10d6   :  { %v1821_v38 = vmul.f32 %v2818_v37, %v2814_v30  ;;  %2732 = vmatprep.subr.bf16.mxu0 %v2731_v45  ;;  %v2400_v37 = vld [vmem:[%s3383_s9 + $0x60] sm:$0xff]  ;;  %v2755_v43 = vpack.c.bf16 %v2403_v42, %v2402_v41 }
0x10d8   :  { %2636 = vmatmul.mubr.msk.f32.vlgmr.msra.gmra.mrb[24].mxu1 %vm341_vm3, %v1821_v38  ;;  %v2401_v38 = vld [vmem:[%s3383_s9 + $0x68] sm:$0xff] }
0x10d9   :  { %2734 = vmatpush3.bf16.msra.mxu0 %v2731_v45  ;;  %2738 = vmatpush3.bf16.msra.mxu1 %v2735_v5  ;;  %v2751_v39 = vpack.c.bf16 %v2401_v38, %v2400_v37 }
0x10da   :  { %2740 = vmatprep.subr.bf16.mxu1 %v2739_v7  ;;  %2744 = vmatprep.subr.bf16.mxu0 %v2743_v33 }
0x10dd   :  { %2742 = vmatpush3.bf16.msra.mxu1 %v2739_v7 }
0x11a7   :  { %v1894_v46 = vpop.f32.mrb[14].mxu0 }
0x11a8   :  { %1976 = vrot.lane.b32.xlu1 %v1894_v46, %s2885_s18  ;;  %v2632_v47 = vpop.f32.mrb[15].mxu0 }
0x11ab   :  { %v1970_v48 = vpop.f32.mrb[24].mxu1 }
0x11ac   :  { %1978 = vrot.lane.b32.xlu1 %v1970_v48, %s2885_s18  ;;  %v2637_v49 = vpop.f32.mrb[25].mxu1 }
0x121a   :  { %v1977_v50 = vpop.permute.xlu1 %1976 }
0x121b   :  { %v1982_v51 = vsel %vm189_vm2, %v1564_v12, %v1977_v50 }
0x121c   :  { %2646 = vmatprep.mubr.msk.f32.mxu0 %vm57_vm0, %v1982_v51 }
0x121e   :  { %v1979_v52 = vpop.permute.xlu1 %1978 }
0x121f   :  { %v1983_v53 = vsel %vm189_vm2, %v1640_v14, %v1979_v52 }
0x1220   :  { %2647 = vmatmul.mubr.msk.f32.vlgmr.msra.gmra.mrb[16].mxu0 %vm57_vm0, %v1983_v53 }
0x1221   :  { %2746 = vmatpush3.bf16.msra.mxu0 %v2743_v33 }
0x1222   :  { %2748 = vmatprep.subr.bf16.mxu0 %v2747_v36 }
0x1225   :  { %2750 = vmatpush3.bf16.msra.mxu0 %v2747_v36 }
0x1226   :  { %2752 = vmatprep.subr.bf16.mxu0 %v2751_v39 }
0x1229   :  { %2754 = vmatpush3.bf16.msra.mxu0 %v2751_v39 }
0x122a   :  { %2756 = vmatprep.subr.bf16.mxu0 %v2755_v43 }
0x122d   :  { %2758 = vmatpush3.bf16.msra.mxu0 %v2755_v43 }
0x12f3   :  { %v2648_v54 = vpop.f32.mrb[16].mxu0 }
0x12f4   :  { %v3286_v56 = vadd.f32 %v2648_v54, %v3164_v3  ;;  %v2061_v58 = vpop.f32.mrb[17].mxu0 }
0x12f5   :  { %v3289_v59 = vadd.f32 %v2061_v58, %v3166_v4 }
0x12f6   :  { %v2077_v60 = vsel %vm57_vm0, %v3286_v56, 0.0  ;;  %v2083_v3 = vmul.f32 %v3286_v56, %v3286_v56 }
0x12f7   :  { %2078 = vadd.xlane.f32.xlu1 %v2077_v60  ;;  %v2074_v61 = vsel %vm57_vm0, %v3289_v59, 0.0  ;;  %v2082_v1 = vmul.f32 %v3289_v59, %v3289_v59 }
0x12f8   :  { %2075 = vadd.xlane.f32.xlu0 %v2074_v61  ;;  %v2087_v4 = vsel %vm57_vm0, %v2083_v3, 0.0  ;;  %v2406_v3 = vld [vmem:[%s3384_s10 + $0x1] ss:$0 sm:$0xff] }
0x12f9   :  { %v2084_v0 = vsel %vm57_vm0, %v2082_v1, 0.0 }
0x12fc   :  { %2085 = vadd.xlane.f32.xlu0 %v2084_v0 }
0x1300   :  { %2088 = vadd.xlane.f32.xlu0 %v2087_v4 }
0x1384   :  { %v2079_v8 = vpop.xlane.xlu1 %2078 }
0x1385   :  { %v2076_v55 = vpop.xlane.xlu0 %2075  ;;  %v2081_v10 = vmul.f32 0.03125, %v2079_v8 }
0x1386   :  { %v2080_v57 = vmul.f32 0.03125, %v2076_v55 }
0x1387   :  { %v2093_v15 = vmul.f32 %v2081_v10, %v2081_v10  ;;  %v2097_v24 = vsub.f32 %v3286_v56, %v2081_v10 }
0x1388   :  { %v2092_v11 = vmul.f32 %v2080_v57, %v2080_v57  ;;  %v2096_v20 = vsub.f32 %v3289_v59, %v2080_v57 }
0x1389   :  { %v2086_v9 = vpop.xlane.xlu0 %2085 }
0x138a   :  { %v2090_v12 = vmul.f32 0.03125, %v2086_v9 }
0x138c   :  { %v2094_v13 = vsub.f32 %v2090_v12, %v2092_v11 }
0x138d   :  { %v2089_v14 = vpop.xlane.xlu0 %2088 }
0x138e   :  { %v2098_v16 = vadd.f32 1e-05, %v2094_v13  ;;  %v2091_v17 = vmul.f32 0.03125, %v2089_v14 }
0x1390   :  { %2819 = vrsqrt.f32 %v2098_v16  ;;  %v2095_v18 = vsub.f32 %v2091_v17, %v2093_v15 }
0x1392   :  { %v2099_v19 = vadd.f32 1e-05, %v2095_v18 }
0x1394   :  { %2821 = vrsqrt.f32 %v2099_v19 }
0x139a   :  { %v2820_v21 = vpop.eup %2819 }
0x139b   :  { %v2102_v23 = vmul.f32 %v2820_v21, %v2096_v20 }
0x139d   :  { %v2108_v25 = vmul.f32 %v2387_v22, %v2102_v23 }
0x139e   :  { %v2822_v26 = vpop.eup %2821 }
0x139f   :  { %v2103_v27 = vmul.f32 %v2822_v26, %v2097_v24  ;;  %v2114_v28 = vadd.f32 %v2388_v40, %v2108_v25 }
0x13a1   :  { %v2109_v29 = vmul.f32 %v2387_v22, %v2103_v27  ;;  %2657 = vmatprep.mubr.msk.f32.mxu1 %vm57_vm0, %v2114_v28 }
0x13a3   :  { %v2115_v30 = vadd.f32 %v2388_v40, %v2109_v29 }
0x13a5   :  { %2658 = vmatmul.mubr.msk.f32.vlgmr.msra.gmra.mrb[26].mxu1 %vm57_vm0, %v2115_v30 }
0x1478   :  { %v2659_v45 = vpop.f32.mrb[26].mxu1 }
0x1479   :  { %v2204_v46 = vadd.f32 %v2659_v45, %v2393_v44  ;;  %v2198_v47 = vpop.f32.mrb[27].mxu1 }
0x147a   :  { %v2199_v48 = vadd.f32 %v2393_v44, %v2198_v47 }
0x147b   :  { %v2210_v49 = vmul.f32 0.70710677, %v2204_v46  ;;  %v2208_v60 = vmul.f32 0.5, %v2204_v46 }
0x147c   :  { %v2209_v50 = vmul.f32 0.70710677, %v2199_v48  ;;  %v2207_v54 = vmul.f32 0.5, %v2199_v48 }
0x147d   :  { %2823 = verf.f32 %v2210_v49 }
0x147e   :  { %2825 = verf.f32 %v2209_v50 }
0x1487   :  { %v2824_v51 = vpop.eup %2823 }
0x1488   :  { %v2826_v52 = vpop.eup %2825  ;;  %v2214_v53 = vadd.f32 1.0, %v2824_v51 }
0x1489   :  { %v2213_v58 = vadd.f32 1.0, %v2826_v52 }
0x148a   :  { %v2216_v1 = vmul.f32 %v2214_v53, %v2208_v60 }
0x148b   :  { %v2215_v61 = vmul.f32 %v2213_v58, %v2207_v54 }
0x148d   :  { %2676 = vmatprep.mubr.msk.f32.mxu0 %vm1095_vm4, %v2215_v61 }
0x148e   :  { %2677 = vmatmul.mubr.msk.f32.vlgmr.msra.gmra.mrb[18].mxu0 %vm1095_vm4, %v2216_v1 }
0x1561   :  { %v2678_v0 = vpop.f32.mrb[18].mxu0 }
0x1562   :  { %v2308_v4 = vadd.f32 %v2678_v0, %v3286_v56  ;;  %v2298_v62 = vpop.f32.mrb[19].mxu0 }
0x1563   :  { %v2307_v63 = vadd.f32 %v2298_v62, %v3289_v59 }
0x1564   :  { %v2315_v2 = vadd.f32 %v2406_v3, %v2308_v4 }
0x1565   :  { %v2314_v5 = vadd.f32 %v2406_v3, %v2307_v63 }
0x1566   :  { %2317 = vst.msk [vmem:[#allocation5 + $0x8] sm:$0xff] %vm57_vm0, %v2315_v2 }
0x1567   :  { %2316 = vst.msk [vmem:[#allocation5] sm:$0xff] %vm57_vm0, %v2314_v5 }
0x1568   :  { %2860 = shalt.err (!%p2857_p12)
}
0x1569   :  { %s2861_s21 = scalar_lea.hbm %s3385_s11, 256 }
0x156a   :  { %p2862_p13 = scmp.ne.s32.totalorder %s3385_s11, %s2861_s21  ;;  %p2865_p0 = scmp.lt.u32.totalorder %s2861_s21, %s3385_s11 }
0x156c   :  { %p2867_p1 = pnand %p2865_p0, %p2862_p13 }
0x156e   :  { %2870 = shalt.err (!%p2867_p1)
}
0x156f   :  { %2329 = dma.vmem_to_hbm [thread:$0]  %s2324_s19, 256, %s3385_s11, [#allocation4], %s2876_s27, %s2876_s27, %s2877_s28  }
0x1570   :  { %2873 = dma.done.wait [#allocation4], 256  }
0x1571   :  { %2874 = vsyncadd [#allocation4], 4294967040 }
0x1572   :  { %2333 = vsyncpa [#allocation3], 1 }
0x1573   :  { %2334 = vsyncpa [#allocation4], 1 }

</bundles_post_ra>
